<compile_context>
chip_gen: v7x
topology: tpu7x:2x2x1
jax: 0.10.0
libtpu: 0.0.40
codegen_flags: <defaults>
</compile_context>

<pallas_src>
import functools
import numpy as np
import jax
import jax.numpy as jnp
from jax.experimental import pallas as pl
from jax.experimental.pallas import tpu as pltpu

LANE = 128


def _silu(v):
    return v * jax.nn.sigmoid(v)


def _full_spec(shape):
    nd = len(shape)
    return pl.BlockSpec(shape, lambda i, _nd=nd: (0,) * _nd)


# -----------------------------------------------------------------------------
# Fused kernel: edge messages + scatter-mean + node update, all in VMEM.
# -----------------------------------------------------------------------------
def gnn_fused_kernel(x_ref, e_ref, nd_ref, src_col_ref, dst_col_ref, dst_row_ref,
                     wx3_ref, wi1b_ref, bi1_ref, wi2_ref, bi2_ref,
                     bm1_ref, wm2_ref, bm2_ref, mask_ref,
                     wu1_ref, bu1_ref, wu2_ref, bu2_ref, gamma_ref, beta_ref,
                     out_ref):
    N, Hp = x_ref.shape
    E = e_ref.shape[0]

    x = x_ref[...]

    # ---- node-level pre-compute: one fused contraction for
    #      [x@wi1a | x@wi1c | x@wm1]  (f_int src/dst halves + f_mes layer 1).
    xw = jnp.dot(x, wx3_ref[...], preferred_element_type=jnp.float32)      # [N, 3*Hp]
    a_n = xw[:, 0:Hp]                                                       # x @ wi1a
    c_n = xw[:, Hp:2 * Hp]                                                  # x @ wi1c
    g1 = _silu(xw[:, 2 * Hp:3 * Hp] + bm1_ref[...])                         # f_mes layer 1
    f_mes_n = _silu(jnp.dot(g1, wm2_ref[...],
                            preferred_element_type=jnp.float32) + bm2_ref[...])  # f_mes(x) [N, Hp]

    # ---- gather / scatter one-hots built in-kernel (VPU iota + compare).
    edge_node_iota = jax.lax.broadcasted_iota(jnp.int32, (E, N), 1)
    gs = (src_col_ref[...] == edge_node_iota).astype(jnp.float32)           # [E, N] gather-by-src
    gd = (dst_col_ref[...] == edge_node_iota).astype(jnp.float32)           # [E, N] gather-by-dst
    node_edge_iota = jax.lax.broadcasted_iota(jnp.int32, (N, E), 0)
    s_dst = (dst_row_ref[...] == node_edge_iota).astype(jnp.float32)        # [N, E] scatter-to-dst

    a_src = jnp.dot(gs, a_n, preferred_element_type=jnp.float32)            # (x@wi1a)[src]
    c_dst = jnp.dot(gd, c_n, preferred_element_type=jnp.float32)            # (x@wi1c)[dst]
    f_mes_src = jnp.dot(gs, f_mes_n, preferred_element_type=jnp.float32)    # f_mes(x)[src]

    # ---- f_int on edges (src/dst contractions already done at node level).
    h = _silu(a_src + c_dst
              + jnp.dot(e_ref[...], wi1b_ref[...], preferred_element_type=jnp.float32)
              + bi1_ref[...])
    h = _silu(jnp.dot(h, wi2_ref[...], preferred_element_type=jnp.float32) + bi2_ref[...])

    # m_st (without decay); decay is folded into the scatter matrix below.
    msg = h * f_mes_src                                                      # [E, Hp]

    # ---- scatter-mean over dst with decay = cos(pi/2 * d) folded into S.
    decay = jnp.cos((jnp.pi / 2.0) * nd_ref[...])                            # [1, E]
    sums = jnp.dot(s_dst * decay, msg, preferred_element_type=jnp.float32)   # [N, Hp]
    counts = jnp.sum(s_dst, axis=1, keepdims=True)                           # [N, 1]
    incoming = sums * pl.reciprocal(jnp.maximum(counts, 1.0), approx=True)   # mean (0 if no edges)

    # ---- node update: m_t + incoming through f_upd.
    m_t = jnp.dot(f_mes_n, mask_ref[...], preferred_element_type=jnp.float32)
    hu = m_t + incoming
    u = _silu(jnp.dot(hu, wu1_ref[...], preferred_element_type=jnp.float32) + bu1_ref[...])
    u = jnp.dot(u, wu2_ref[...], preferred_element_type=jnp.float32) + bu2_ref[...]

    # BatchNorm1d, training mode: batch statistics, biased variance, eps=1e-5.
    mean = jnp.mean(u, axis=0, keepdims=True)
    var = jnp.mean((u - mean) ** 2, axis=0, keepdims=True)
    u = (u - mean) * jax.lax.rsqrt(var + 1e-5) * gamma_ref[...] + beta_ref[...]

    out_ref[...] = _silu(u)


# -----------------------------------------------------------------------------
# Wrapper
# -----------------------------------------------------------------------------
@jax.jit
def gnn_layer_forward(x, edge_index, norm_distance, init_edge_states, prepared):
    N, H = x.shape
    E = init_edge_states.shape[0]
    Hp = prepared["wi1b"].shape[0]

    # Lane-dense zero padding of the activations (exact: padded cols stay 0).
    x_p = jnp.pad(x.astype(jnp.float32), ((0, 0), (0, Hp - H)))
    e_p = jnp.pad(init_edge_states.astype(jnp.float32), ((0, 0), (0, Hp - H)))

    src = edge_index[0].astype(jnp.int32)
    dst = edge_index[1].astype(jnp.int32)
    src_col = src.reshape(E, 1)
    dst_col = dst.reshape(E, 1)
    dst_row = dst.reshape(1, E)
    nd_row = norm_distance.reshape(1, E).astype(jnp.float32)

    args = (x_p, e_p, nd_row, src_col, dst_col, dst_row,
            prepared["wx3"], prepared["wi1b"], prepared["bi1"],
            prepared["wi2"], prepared["bi2"],
            prepared["bm1"], prepared["wm2"], prepared["bm2"], prepared["mask"],
            prepared["wu1"], prepared["bu1"], prepared["wu2"], prepared["bu2"],
            prepared["gamma"], prepared["beta"])

    out_p = pl.pallas_call(
        gnn_fused_kernel,
        out_shape=jax.ShapeDtypeStruct((N, Hp), jnp.float32),
        grid=(1,),
        in_specs=[_full_spec(a.shape) for a in args],
        out_specs=_full_spec((N, Hp)),
        compiler_params=pltpu.CompilerParams(dimension_semantics=("arbitrary",)),
    )(*args)

    return out_p[:, :H]


# -----------------------------------------------------------------------------
# Parameter handling
# -----------------------------------------------------------------------------
def init_params(key, H):
    """Logical (unpadded) parameters; shapes follow GNNLayer.__init__.
    Linear weights are stored as [in_features, out_features] (torch W.T)."""
    ks = jax.random.split(key, 16)
    s = 1.0 / np.sqrt(H)

    def w(k, shape):
        return jax.random.uniform(k, shape, jnp.float32, -s, s)

    return {
        # f_int: Linear(3H->H) split into three [H,H] row blocks, then Linear(H->H)
        "wi1a": w(ks[0], (H, H)), "wi1b": w(ks[1], (H, H)), "wi1c": w(ks[2], (H, H)),
        "bi1": w(ks[3], (1, H)),
        "wi2": w(ks[4], (H, H)), "bi2": w(ks[5], (1, H)),
        # f_mes
        "wm1": w(ks[6], (H, H)), "bm1": w(ks[7], (1, H)),
        "wm2": w(ks[8], (H, H)), "bm2": w(ks[9], (1, H)),
        # f_upd (+ BatchNorm affine)
        "wu1": w(ks[10], (H, H)), "bu1": w(ks[11], (1, H)),
        "wu2": w(ks[12], (H, H)), "bu2": w(ks[13], (1, H)),
        "gamma": jnp.ones((1, H), jnp.float32),
        "beta": jnp.zeros((1, H), jnp.float32),
        # ind_imp_mask (zeros in torch; random here so the path is non-trivial)
        "mask": w(ks[14], (H, H)),
    }


def prepare_params(p, lane=LANE):
    """One-time zero-padding of every weight/bias to lane-dense width Hp and
    fusion of the three x-contractions (wi1a | wi1c | wm1) into one matrix."""
    H = p["wi2"].shape[0]
    Hp = max(lane, ((H + lane - 1) // lane) * lane)

    def pad_w(w):
        return jnp.zeros((Hp, Hp), jnp.float32).at[:H, :H].set(w)

    def pad_b(b):
        return jnp.zeros((1, Hp), jnp.float32).at[:, :H].set(b)

    wx3 = jnp.concatenate([pad_w(p["wi1a"]), pad_w(p["wi1c"]), pad_w(p["wm1"])], axis=1)
    return {
        "wx3": wx3,
        "wi1b": pad_w(p["wi1b"]), "bi1": pad_b(p["bi1"]),
        "wi2": pad_w(p["wi2"]), "bi2": pad_b(p["bi2"]),
        "bm1": pad_b(p["bm1"]), "wm2": pad_w(p["wm2"]), "bm2": pad_b(p["bm2"]),
        "mask": pad_w(p["mask"]),
        "wu1": pad_w(p["wu1"]), "bu1": pad_b(p["bu1"]),
        "wu2": pad_w(p["wu2"]), "bu2": pad_b(p["bu2"]),
        "gamma": pad_b(p["gamma"]), "beta": pad_b(p["beta"]),
    }


# -----------------------------------------------------------------------------
# Pure-JAX reference (same math, unpadded, for a sanity check)
# -----------------------------------------------------------------------------
def gnn_layer_reference(x, edge_index, norm_distance, init_edge_states, p):
    N, H = x.shape
    src, dst = edge_index[0], edge_index[1]
    xs, xd = x[src], x[dst]
    decay = jnp.cos(jnp.pi / 2.0 * norm_distance).reshape(-1, 1)

    h = xs @ p["wi1a"] + init_edge_states @ p["wi1b"] + xd @ p["wi1c"] + p["bi1"]
    h = _silu(h)
    h = _silu(h @ p["wi2"] + p["bi2"])
    int_imp = decay * h

    def f_mes(v):
        g = _silu(v @ p["wm1"] + p["bm1"])
        return _silu(g @ p["wm2"] + p["bm2"])

    m_st = int_imp * f_mes(xs)
    m_t = f_mes(x) @ p["mask"]

    sums = jax.ops.segment_sum(m_st, dst, num_segments=N)
    counts = jax.ops.segment_sum(jnp.ones((m_st.shape[0],)), dst, num_segments=N)
    incoming = sums / jnp.maximum(counts, 1.0)[:, None]

    u = _silu((m_t + incoming) @ p["wu1"] + p["bu1"])
    u = u @ p["wu2"] + p["bu2"]
    mean = jnp.mean(u, axis=0, keepdims=True)
    var = jnp.mean((u - mean) ** 2, axis=0, keepdims=True)
    u = (u - mean) * jax.lax.rsqrt(var + 1e-5) * p["gamma"] + p["beta"]
    return _silu(u)


if __name__ == "__main__":
    H = 32       # hidden_size
    N = 16       # nodes
    E = 32       # edges

    key = jax.random.PRNGKey(0)
    kx, ke, kd, ks, kp = jax.random.split(key, 5)

    x = jax.random.normal(kx, (N, H), jnp.float32)
    src = jax.random.randint(ke, (E,), 0, N, jnp.int32)
    dst = jax.random.randint(ks, (E,), 0, N, jnp.int32)
    edge_index = jnp.stack([src, dst], axis=0)                      # [2, E]
    norm_distance = jax.random.uniform(kd, (E,), jnp.float32)       # [E]
    init_edge_states = jax.random.normal(jax.random.fold_in(ke, 1), (E, H), jnp.float32)

    params = init_params(kp, H)
    prepared = prepare_params(params)

    out = gnn_layer_forward(x, edge_index, norm_distance, init_edge_states, prepared)
    out = jax.block_until_ready(out)

    ref = gnn_layer_reference(x, edge_index, norm_distance, init_edge_states, params)
    assert out.shape == (N, H)
    assert bool(jnp.all(jnp.isfinite(out)))
    np.testing.assert_allclose(np.asarray(out), np.asarray(ref), rtol=2e-2, atol=2e-2)

    print("KERNEL_OK")
</pallas_src>

<mosaic_0001>
module attributes {stable_mosaic.version = 11 : i64} {
  func.func @gnn_fused_kernel(%arg0: i32, %arg1: memref<16x128xf32, #tpu.memory_space<vmem>>, %arg2: memref<32x128xf32, #tpu.memory_space<vmem>>, %arg3: memref<1x32xf32, #tpu.memory_space<vmem>>, %arg4: memref<32x1xi32, #tpu.memory_space<vmem>>, %arg5: memref<32x1xi32, #tpu.memory_space<vmem>>, %arg6: memref<1x32xi32, #tpu.memory_space<vmem>>, %arg7: memref<128x384xf32, #tpu.memory_space<vmem>>, %arg8: memref<128x128xf32, #tpu.memory_space<vmem>>, %arg9: memref<1x128xf32, #tpu.memory_space<vmem>>, %arg10: memref<128x128xf32, #tpu.memory_space<vmem>>, %arg11: memref<1x128xf32, #tpu.memory_space<vmem>>, %arg12: memref<1x128xf32, #tpu.memory_space<vmem>>, %arg13: memref<128x128xf32, #tpu.memory_space<vmem>>, %arg14: memref<1x128xf32, #tpu.memory_space<vmem>>, %arg15: memref<128x128xf32, #tpu.memory_space<vmem>>, %arg16: memref<128x128xf32, #tpu.memory_space<vmem>>, %arg17: memref<1x128xf32, #tpu.memory_space<vmem>>, %arg18: memref<128x128xf32, #tpu.memory_space<vmem>>, %arg19: memref<1x128xf32, #tpu.memory_space<vmem>>, %arg20: memref<1x128xf32, #tpu.memory_space<vmem>>, %arg21: memref<1x128xf32, #tpu.memory_space<vmem>>, %arg22: memref<16x128xf32, #tpu.memory_space<vmem>>) attributes {dimension_semantics = [#tpu.dimension_semantics<arbitrary>], iteration_bounds = array<i64: 1>, scalar_prefetch = 0 : i64, scratch_operands = 0 : i64, tpu.core_type = #tpu.core_type<tc>, window_params = [{pipeline_mode = #tpu.pipeline_mode<synchronous>, transform_indices = @transform_0, window_bounds = array<i64: 16, 128>}, {pipeline_mode = #tpu.pipeline_mode<synchronous>, transform_indices = @transform_1, window_bounds = array<i64: 32, 128>}, {pipeline_mode = #tpu.pipeline_mode<synchronous>, transform_indices = @transform_2, window_bounds = array<i64: 1, 32>}, {pipeline_mode = #tpu.pipeline_mode<synchronous>, transform_indices = @transform_3, window_bounds = array<i64: 32, 1>}, {pipeline_mode = #tpu.pipeline_mode<synchronous>, transform_indices = @transform_4, window_bounds = array<i64: 32, 1>}, {pipeline_mode = #tpu.pipeline_mode<synchronous>, transform_indices = @transform_5, window_bounds = array<i64: 1, 32>}, {pipeline_mode = #tpu.pipeline_mode<synchronous>, transform_indices = @transform_6, window_bounds = array<i64: 128, 384>}, {pipeline_mode = #tpu.pipeline_mode<synchronous>, transform_indices = @transform_7, window_bounds = array<i64: 128, 128>}, {pipeline_mode = #tpu.pipeline_mode<synchronous>, transform_indices = @transform_8, window_bounds = array<i64: 1, 128>}, {pipeline_mode = #tpu.pipeline_mode<synchronous>, transform_indices = @transform_9, window_bounds = array<i64: 128, 128>}, {pipeline_mode = #tpu.pipeline_mode<synchronous>, transform_indices = @transform_10, window_bounds = array<i64: 1, 128>}, {pipeline_mode = #tpu.pipeline_mode<synchronous>, transform_indices = @transform_11, window_bounds = array<i64: 1, 128>}, {pipeline_mode = #tpu.pipeline_mode<synchronous>, transform_indices = @transform_12, window_bounds = array<i64: 128, 128>}, {pipeline_mode = #tpu.pipeline_mode<synchronous>, transform_indices = @transform_13, window_bounds = array<i64: 1, 128>}, {pipeline_mode = #tpu.pipeline_mode<synchronous>, transform_indices = @transform_14, window_bounds = array<i64: 128, 128>}, {pipeline_mode = #tpu.pipeline_mode<synchronous>, transform_indices = @transform_15, window_bounds = array<i64: 128, 128>}, {pipeline_mode = #tpu.pipeline_mode<synchronous>, transform_indices = @transform_16, window_bounds = array<i64: 1, 128>}, {pipeline_mode = #tpu.pipeline_mode<synchronous>, transform_indices = @transform_17, window_bounds = array<i64: 128, 128>}, {pipeline_mode = #tpu.pipeline_mode<synchronous>, transform_indices = @transform_18, window_bounds = array<i64: 1, 128>}, {pipeline_mode = #tpu.pipeline_mode<synchronous>, transform_indices = @transform_19, window_bounds = array<i64: 1, 128>}, {pipeline_mode = #tpu.pipeline_mode<synchronous>, transform_indices = @transform_20, window_bounds = array<i64: 1, 128>}, {pipeline_mode = #tpu.pipeline_mode<synchronous>, transform_indices = @transform_21, window_bounds = array<i64: 16, 128>}]} {
    %c0 = arith.constant 0 : index
    %c0_0 = arith.constant 0 : index
    %0 = vector.load %arg1[%c0, %c0_0] : memref<16x128xf32, #tpu.memory_space<vmem>>, vector<16x128xf32>
    %c0_1 = arith.constant 0 : index
    %c0_2 = arith.constant 0 : index
    %1 = vector.load %arg7[%c0_1, %c0_2] : memref<128x384xf32, #tpu.memory_space<vmem>>, vector<128x384xf32>
    %cst = arith.constant dense<0.000000e+00> : vector<16x384xf32>
    %2 = tpu.matmul %0, %1, %cst {dimension_numbers = #tpu.dot_dimension_numbers<[1], [0], [0], [1], [0, 0, 1, 1], [], []>} : vector<16x128xf32>, vector<128x384xf32>, vector<16x384xf32> -> vector<16x384xf32>
    %3 = vector.extract_strided_slice %2 {offsets = [0, 0], sizes = [16, 128], strides = [1, 1]} : vector<16x384xf32> to vector<16x128xf32>
    %4 = vector.extract_strided_slice %2 {offsets = [0, 128], sizes = [16, 128], strides = [1, 1]} : vector<16x384xf32> to vector<16x128xf32>
    %5 = vector.extract_strided_slice %2 {offsets = [0, 256], sizes = [16, 128], strides = [1, 1]} : vector<16x384xf32> to vector<16x128xf32>
    %c0_3 = arith.constant 0 : index
    %c0_4 = arith.constant 0 : index
    %6 = vector.load %arg12[%c0_3, %c0_4] : memref<1x128xf32, #tpu.memory_space<vmem>>, vector<1x128xf32>
    %7 = vector.broadcast %6 : vector<1x128xf32> to vector<16x128xf32>
    %8 = arith.addf %5, %7 : vector<16x128xf32>
    %9 = arith.negf %8 : vector<16x128xf32>
    %10 = math.exp %9 : vector<16x128xf32>
    %cst_5 = arith.constant 1.000000e+00 : f32
    %11 = vector.broadcast %cst_5 : f32 to vector<16x128xf32>
    %12 = arith.addf %11, %10 : vector<16x128xf32>
    %13 = arith.divf %11, %12 : vector<16x128xf32>
    %14 = arith.mulf %8, %13 : vector<16x128xf32>
    %c0_6 = arith.constant 0 : index
    %c0_7 = arith.constant 0 : index
    %15 = vector.load %arg13[%c0_6, %c0_7] : memref<128x128xf32, #tpu.memory_space<vmem>>, vector<128x128xf32>
    %cst_8 = arith.constant dense<0.000000e+00> : vector<16x128xf32>
    %16 = tpu.matmul %14, %15, %cst_8 {dimension_numbers = #tpu.dot_dimension_numbers<[1], [0], [0], [1], [0, 0, 1, 1], [], []>} : vector<16x128xf32>, vector<128x128xf32>, vector<16x128xf32> -> vector<16x128xf32>
    %c0_9 = arith.constant 0 : index
    %c0_10 = arith.constant 0 : index
    %17 = vector.load %arg14[%c0_9, %c0_10] : memref<1x128xf32, #tpu.memory_space<vmem>>, vector<1x128xf32>
    %18 = vector.broadcast %17 : vector<1x128xf32> to vector<16x128xf32>
    %19 = arith.addf %16, %18 : vector<16x128xf32>
    %20 = arith.negf %19 : vector<16x128xf32>
    %21 = math.exp %20 : vector<16x128xf32>
    %cst_11 = arith.constant 1.000000e+00 : f32
    %22 = vector.broadcast %cst_11 : f32 to vector<16x128xf32>
    %23 = arith.addf %22, %21 : vector<16x128xf32>
    %24 = arith.divf %22, %23 : vector<16x128xf32>
    %25 = arith.mulf %19, %24 : vector<16x128xf32>
    %26 = tpu.iota {dimensions = array<i32: 1>} : vector<32x16xi32>
    %c0_12 = arith.constant 0 : index
    %c0_13 = arith.constant 0 : index
    %27 = vector.load %arg4[%c0_12, %c0_13] : memref<32x1xi32, #tpu.memory_space<vmem>>, vector<32x1xi32>
    %28 = vector.broadcast %27 : vector<32x1xi32> to vector<32x16xi32>
    %29 = arith.cmpi eq, %28, %26 : vector<32x16xi32>
    %30 = arith.extui %29 : vector<32x16xi1> to vector<32x16xi32>
    %31 = arith.sitofp %30 : vector<32x16xi32> to vector<32x16xf32>
    %c0_14 = arith.constant 0 : index
    %c0_15 = arith.constant 0 : index
    %32 = vector.load %arg5[%c0_14, %c0_15] : memref<32x1xi32, #tpu.memory_space<vmem>>, vector<32x1xi32>
    %33 = vector.broadcast %32 : vector<32x1xi32> to vector<32x16xi32>
    %34 = arith.cmpi eq, %33, %26 : vector<32x16xi32>
    %35 = arith.extui %34 : vector<32x16xi1> to vector<32x16xi32>
    %36 = arith.sitofp %35 : vector<32x16xi32> to vector<32x16xf32>
    %37 = tpu.iota {dimensions = array<i32: 0>} : vector<16x32xi32>
    %c0_16 = arith.constant 0 : index
    %c0_17 = arith.constant 0 : index
    %38 = vector.load %arg6[%c0_16, %c0_17] : memref<1x32xi32, #tpu.memory_space<vmem>>, vector<1x32xi32>
    %39 = vector.broadcast %38 : vector<1x32xi32> to vector<16x32xi32>
    %40 = arith.cmpi eq, %39, %37 : vector<16x32xi32>
    %41 = arith.extui %40 : vector<16x32xi1> to vector<16x32xi32>
    %42 = arith.sitofp %41 : vector<16x32xi32> to vector<16x32xf32>
    %cst_18 = arith.constant dense<0.000000e+00> : vector<32x128xf32>
    %43 = tpu.matmul %31, %3, %cst_18 {dimension_numbers = #tpu.dot_dimension_numbers<[1], [0], [0], [1], [0, 0, 1, 1], [], []>} : vector<32x16xf32>, vector<16x128xf32>, vector<32x128xf32> -> vector<32x128xf32>
    %cst_19 = arith.constant dense<0.000000e+00> : vector<32x128xf32>
    %44 = tpu.matmul %36, %4, %cst_19 {dimension_numbers = #tpu.dot_dimension_numbers<[1], [0], [0], [1], [0, 0, 1, 1], [], []>} : vector<32x16xf32>, vector<16x128xf32>, vector<32x128xf32> -> vector<32x128xf32>
    %cst_20 = arith.constant dense<0.000000e+00> : vector<32x128xf32>
    %45 = tpu.matmul %31, %25, %cst_20 {dimension_numbers = #tpu.dot_dimension_numbers<[1], [0], [0], [1], [0, 0, 1, 1], [], []>} : vector<32x16xf32>, vector<16x128xf32>, vector<32x128xf32> -> vector<32x128xf32>
    %46 = arith.addf %43, %44 : vector<32x128xf32>
    %c0_21 = arith.constant 0 : index
    %c0_22 = arith.constant 0 : index
    %47 = vector.load %arg2[%c0_21, %c0_22] : memref<32x128xf32, #tpu.memory_space<vmem>>, vector<32x128xf32>
    %c0_23 = arith.constant 0 : index
    %c0_24 = arith.constant 0 : index
    %48 = vector.load %arg8[%c0_23, %c0_24] : memref<128x128xf32, #tpu.memory_space<vmem>>, vector<128x128xf32>
    %cst_25 = arith.constant dense<0.000000e+00> : vector<32x128xf32>
    %49 = tpu.matmul %47, %48, %cst_25 {dimension_numbers = #tpu.dot_dimension_numbers<[1], [0], [0], [1], [0, 0, 1, 1], [], []>} : vector<32x128xf32>, vector<128x128xf32>, vector<32x128xf32> -> vector<32x128xf32>
    %50 = arith.addf %46, %49 : vector<32x128xf32>
    %c0_26 = arith.constant 0 : index
    %c0_27 = arith.constant 0 : index
    %51 = vector.load %arg9[%c0_26, %c0_27] : memref<1x128xf32, #tpu.memory_space<vmem>>, vector<1x128xf32>
    %52 = vector.broadcast %51 : vector<1x128xf32> to vector<32x128xf32>
    %53 = arith.addf %50, %52 : vector<32x128xf32>
    %54 = arith.negf %53 : vector<32x128xf32>
    %55 = math.exp %54 : vector<32x128xf32>
    %cst_28 = arith.constant 1.000000e+00 : f32
    %56 = vector.broadcast %cst_28 : f32 to vector<32x128xf32>
    %57 = arith.addf %56, %55 : vector<32x128xf32>
    %58 = arith.divf %56, %57 : vector<32x128xf32>
    %59 = arith.mulf %53, %58 : vector<32x128xf32>
    %c0_29 = arith.constant 0 : index
    %c0_30 = arith.constant 0 : index
    %60 = vector.load %arg10[%c0_29, %c0_30] : memref<128x128xf32, #tpu.memory_space<vmem>>, vector<128x128xf32>
    %cst_31 = arith.constant dense<0.000000e+00> : vector<32x128xf32>
    %61 = tpu.matmul %59, %60, %cst_31 {dimension_numbers = #tpu.dot_dimension_numbers<[1], [0], [0], [1], [0, 0, 1, 1], [], []>} : vector<32x128xf32>, vector<128x128xf32>, vector<32x128xf32> -> vector<32x128xf32>
    %c0_32 = arith.constant 0 : index
    %c0_33 = arith.constant 0 : index
    %62 = vector.load %arg11[%c0_32, %c0_33] : memref<1x128xf32, #tpu.memory_space<vmem>>, vector<1x128xf32>
    %63 = vector.broadcast %62 : vector<1x128xf32> to vector<32x128xf32>
    %64 = arith.addf %61, %63 : vector<32x128xf32>
    %65 = arith.negf %64 : vector<32x128xf32>
    %66 = math.exp %65 : vector<32x128xf32>
    %cst_34 = arith.constant 1.000000e+00 : f32
    %67 = vector.broadcast %cst_34 : f32 to vector<32x128xf32>
    %68 = arith.addf %67, %66 : vector<32x128xf32>
    %69 = arith.divf %67, %68 : vector<32x128xf32>
    %70 = arith.mulf %64, %69 : vector<32x128xf32>
    %71 = arith.mulf %70, %45 : vector<32x128xf32>
    %c0_35 = arith.constant 0 : index
    %c0_36 = arith.constant 0 : index
    %72 = vector.load %arg3[%c0_35, %c0_36] : memref<1x32xf32, #tpu.memory_space<vmem>>, vector<1x32xf32>
    %cst_37 = arith.constant 1.57079637 : f32
    %73 = vector.broadcast %cst_37 : f32 to vector<1x32xf32>
    %74 = arith.mulf %73, %72 : vector<1x32xf32>
    %75 = math.cos %74 : vector<1x32xf32>
    %76 = vector.broadcast %75 : vector<1x32xf32> to vector<16x32xf32>
    %77 = arith.mulf %42, %76 : vector<16x32xf32>
    %cst_38 = arith.constant dense<0.000000e+00> : vector<16x128xf32>
    %78 = tpu.matmul %77, %71, %cst_38 {dimension_numbers = #tpu.dot_dimension_numbers<[1], [0], [0], [1], [0, 0, 1, 1], [], []>} : vector<16x32xf32>, vector<32x128xf32>, vector<16x128xf32> -> vector<16x128xf32>
    %cst_39 = arith.constant dense<0.000000e+00> : vector<16xf32>
    %79 = vector.multi_reduction <add>, %42, %cst_39 [1] : vector<16x32xf32> to vector<16xf32>
    %80 = vector.shape_cast %79 : vector<16xf32> to vector<16x1xf32>
    %cst_40 = arith.constant 1.000000e+00 : f32
    %81 = vector.broadcast %cst_40 : f32 to vector<16x1xf32>
    %82 = arith.maximumf %80, %81 : vector<16x1xf32>
    %83 = tpu.reciprocal %82 {approx = true} : vector<16x1xf32> -> vector<16x1xf32>
    %84 = vector.broadcast %83 : vector<16x1xf32> to vector<16x128xf32>
    %85 = arith.mulf %78, %84 : vector<16x128xf32>
    %c0_41 = arith.constant 0 : index
    %c0_42 = arith.constant 0 : index
    %86 = vector.load %arg15[%c0_41, %c0_42] : memref<128x128xf32, #tpu.memory_space<vmem>>, vector<128x128xf32>
    %cst_43 = arith.constant dense<0.000000e+00> : vector<16x128xf32>
    %87 = tpu.matmul %25, %86, %cst_43 {dimension_numbers = #tpu.dot_dimension_numbers<[1], [0], [0], [1], [0, 0, 1, 1], [], []>} : vector<16x128xf32>, vector<128x128xf32>, vector<16x128xf32> -> vector<16x128xf32>
    %88 = arith.addf %87, %85 : vector<16x128xf32>
    %c0_44 = arith.constant 0 : index
    %c0_45 = arith.constant 0 : index
    %89 = vector.load %arg16[%c0_44, %c0_45] : memref<128x128xf32, #tpu.memory_space<vmem>>, vector<128x128xf32>
    %cst_46 = arith.constant dense<0.000000e+00> : vector<16x128xf32>
    %90 = tpu.matmul %88, %89, %cst_46 {dimension_numbers = #tpu.dot_dimension_numbers<[1], [0], [0], [1], [0, 0, 1, 1], [], []>} : vector<16x128xf32>, vector<128x128xf32>, vector<16x128xf32> -> vector<16x128xf32>
    %c0_47 = arith.constant 0 : index
    %c0_48 = arith.constant 0 : index
    %91 = vector.load %arg17[%c0_47, %c0_48] : memref<1x128xf32, #tpu.memory_space<vmem>>, vector<1x128xf32>
    %92 = vector.broadcast %91 : vector<1x128xf32> to vector<16x128xf32>
    %93 = arith.addf %90, %92 : vector<16x128xf32>
    %94 = arith.negf %93 : vector<16x128xf32>
    %95 = math.exp %94 : vector<16x128xf32>
    %cst_49 = arith.constant 1.000000e+00 : f32
    %96 = vector.broadcast %cst_49 : f32 to vector<16x128xf32>
    %97 = arith.addf %96, %95 : vector<16x128xf32>
    %98 = arith.divf %96, %97 : vector<16x128xf32>
    %99 = arith.mulf %93, %98 : vector<16x128xf32>
    %c0_50 = arith.constant 0 : index
    %c0_51 = arith.constant 0 : index
    %100 = vector.load %arg18[%c0_50, %c0_51] : memref<128x128xf32, #tpu.memory_space<vmem>>, vector<128x128xf32>
    %cst_52 = arith.constant dense<0.000000e+00> : vector<16x128xf32>
    %101 = tpu.matmul %99, %100, %cst_52 {dimension_numbers = #tpu.dot_dimension_numbers<[1], [0], [0], [1], [0, 0, 1, 1], [], []>} : vector<16x128xf32>, vector<128x128xf32>, vector<16x128xf32> -> vector<16x128xf32>
    %c0_53 = arith.constant 0 : index
    %c0_54 = arith.constant 0 : index
    %102 = vector.load %arg19[%c0_53, %c0_54] : memref<1x128xf32, #tpu.memory_space<vmem>>, vector<1x128xf32>
    %103 = vector.broadcast %102 : vector<1x128xf32> to vector<16x128xf32>
    %104 = arith.addf %101, %103 : vector<16x128xf32>
    %cst_55 = arith.constant dense<0.000000e+00> : vector<128xf32>
    %105 = vector.multi_reduction <add>, %104, %cst_55 [0] : vector<16x128xf32> to vector<128xf32>
    %106 = vector.shape_cast %105 : vector<128xf32> to vector<1x128xf32>
    %cst_56 = arith.constant 1.600000e+01 : f32
    %107 = vector.broadcast %cst_56 : f32 to vector<1x128xf32>
    %108 = arith.divf %106, %107 : vector<1x128xf32>
    %109 = vector.broadcast %108 : vector<1x128xf32> to vector<16x128xf32>
    %110 = arith.subf %104, %109 : vector<16x128xf32>
    %111 = arith.mulf %110, %110 : vector<16x128xf32>
    %cst_57 = arith.constant dense<0.000000e+00> : vector<128xf32>
    %112 = vector.multi_reduction <add>, %111, %cst_57 [0] : vector<16x128xf32> to vector<128xf32>
    %113 = vector.shape_cast %112 : vector<128xf32> to vector<1x128xf32>
    %cst_58 = arith.constant 1.600000e+01 : f32
    %114 = vector.broadcast %cst_58 : f32 to vector<1x128xf32>
    %115 = arith.divf %113, %114 : vector<1x128xf32>
    %116 = vector.broadcast %108 : vector<1x128xf32> to vector<16x128xf32>
    %117 = arith.subf %104, %116 : vector<16x128xf32>
    %cst_59 = arith.constant 9.99999974E-6 : f32
    %118 = vector.broadcast %cst_59 : f32 to vector<1x128xf32>
    %119 = arith.addf %115, %118 : vector<1x128xf32>
    %120 = math.rsqrt %119 : vector<1x128xf32>
    %121 = vector.broadcast %120 : vector<1x128xf32> to vector<16x128xf32>
    %122 = arith.mulf %117, %121 : vector<16x128xf32>
    %c0_60 = arith.constant 0 : index
    %c0_61 = arith.constant 0 : index
    %123 = vector.load %arg20[%c0_60, %c0_61] : memref<1x128xf32, #tpu.memory_space<vmem>>, vector<1x128xf32>
    %124 = vector.broadcast %123 : vector<1x128xf32> to vector<16x128xf32>
    %125 = arith.mulf %122, %124 : vector<16x128xf32>
    %c0_62 = arith.constant 0 : index
    %c0_63 = arith.constant 0 : index
    %126 = vector.load %arg21[%c0_62, %c0_63] : memref<1x128xf32, #tpu.memory_space<vmem>>, vector<1x128xf32>
    %127 = vector.broadcast %126 : vector<1x128xf32> to vector<16x128xf32>
    %128 = arith.addf %125, %127 : vector<16x128xf32>
    %129 = arith.negf %128 : vector<16x128xf32>
    %130 = math.exp %129 : vector<16x128xf32>
    %cst_64 = arith.constant 1.000000e+00 : f32
    %131 = vector.broadcast %cst_64 : f32 to vector<16x128xf32>
    %132 = arith.addf %131, %130 : vector<16x128xf32>
    %133 = arith.divf %131, %132 : vector<16x128xf32>
    %134 = arith.mulf %128, %133 : vector<16x128xf32>
    %c0_65 = arith.constant 0 : index
    %c0_66 = arith.constant 0 : index
    %135 = vector.load %arg22[%c0_65, %c0_66] : memref<16x128xf32, #tpu.memory_space<vmem>>, vector<16x128xf32>
    tpu.vector_store %arg22[%c0_65, %c0_66], %134 {strides = array<i32>} : memref<16x128xf32, #tpu.memory_space<vmem>>, vector<16x128xf32>,
    return
  }
  func.func @transform_0(%arg0: i32) -> (i32, i32) {
    %c0_i32 = arith.constant 0 : i32
    %c0_i32_0 = arith.constant 0 : i32
    %c0_i32_1 = arith.constant 0 : i32
    return %c0_i32, %c0_i32_0 : i32, i32
  }
  func.func @transform_1(%arg0: i32) -> (i32, i32) {
    %c0_i32 = arith.constant 0 : i32
    %c0_i32_0 = arith.constant 0 : i32
    %c0_i32_1 = arith.constant 0 : i32
    return %c0_i32, %c0_i32_0 : i32, i32
  }
  func.func @transform_2(%arg0: i32) -> (i32, i32) {
    %c0_i32 = arith.constant 0 : i32
    %c0_i32_0 = arith.constant 0 : i32
    %c0_i32_1 = arith.constant 0 : i32
    return %c0_i32, %c0_i32_0 : i32, i32
  }
  func.func @transform_3(%arg0: i32) -> (i32, i32) {
    %c0_i32 = arith.constant 0 : i32
    %c0_i32_0 = arith.constant 0 : i32
    %c0_i32_1 = arith.constant 0 : i32
    return %c0_i32, %c0_i32_0 : i32, i32
  }
  func.func @transform_4(%arg0: i32) -> (i32, i32) {
    %c0_i32 = arith.constant 0 : i32
    %c0_i32_0 = arith.constant 0 : i32
    %c0_i32_1 = arith.constant 0 : i32
    return %c0_i32, %c0_i32_0 : i32, i32
  }
  func.func @transform_5(%arg0: i32) -> (i32, i32) {
    %c0_i32 = arith.constant 0 : i32
    %c0_i32_0 = arith.constant 0 : i32
    %c0_i32_1 = arith.constant 0 : i32
    return %c0_i32, %c0_i32_0 : i32, i32
  }
  func.func @transform_6(%arg0: i32) -> (i32, i32) {
    %c0_i32 = arith.constant 0 : i32
    %c0_i32_0 = arith.constant 0 : i32
    %c0_i32_1 = arith.constant 0 : i32
    return %c0_i32, %c0_i32_0 : i32, i32
  }
  func.func @transform_7(%arg0: i32) -> (i32, i32) {
    %c0_i32 = arith.constant 0 : i32
    %c0_i32_0 = arith.constant 0 : i32
    %c0_i32_1 = arith.constant 0 : i32
    return %c0_i32, %c0_i32_0 : i32, i32
  }
  func.func @transform_8(%arg0: i32) -> (i32, i32) {
    %c0_i32 = arith.constant 0 : i32
    %c0_i32_0 = arith.constant 0 : i32
    %c0_i32_1 = arith.constant 0 : i32
    return %c0_i32, %c0_i32_0 : i32, i32
  }
  func.func @transform_9(%arg0: i32) -> (i32, i32) {
    %c0_i32 = arith.constant 0 : i32
    %c0_i32_0 = arith.constant 0 : i32
    %c0_i32_1 = arith.constant 0 : i32
    return %c0_i32, %c0_i32_0 : i32, i32
  }
  func.func @transform_10(%arg0: i32) -> (i32, i32) {
    %c0_i32 = arith.constant 0 : i32
    %c0_i32_0 = arith.constant 0 : i32
    %c0_i32_1 = arith.constant 0 : i32
    return %c0_i32, %c0_i32_0 : i32, i32
  }
  func.func @transform_11(%arg0: i32) -> (i32, i32) {
    %c0_i32 = arith.constant 0 : i32
    %c0_i32_0 = arith.constant 0 : i32
    %c0_i32_1 = arith.constant 0 : i32
    return %c0_i32, %c0_i32_0 : i32, i32
  }
  func.func @transform_12(%arg0: i32) -> (i32, i32) {
    %c0_i32 = arith.constant 0 : i32
    %c0_i32_0 = arith.constant 0 : i32
    %c0_i32_1 = arith.constant 0 : i32
    return %c0_i32, %c0_i32_0 : i32, i32
  }
  func.func @transform_13(%arg0: i32) -> (i32, i32) {
    %c0_i32 = arith.constant 0 : i32
    %c0_i32_0 = arith.constant 0 : i32
    %c0_i32_1 = arith.constant 0 : i32
    return %c0_i32, %c0_i32_0 : i32, i32
  }
  func.func @transform_14(%arg0: i32) -> (i32, i32) {
    %c0_i32 = arith.constant 0 : i32
    %c0_i32_0 = arith.constant 0 : i32
    %c0_i32_1 = arith.constant 0 : i32
    return %c0_i32, %c0_i32_0 : i32, i32
  }
  func.func @transform_15(%arg0: i32) -> (i32, i32) {
    %c0_i32 = arith.constant 0 : i32
    %c0_i32_0 = arith.constant 0 : i32
    %c0_i32_1 = arith.constant 0 : i32
    return %c0_i32, %c0_i32_0 : i32, i32
  }
  func.func @transform_16(%arg0: i32) -> (i32, i32) {
    %c0_i32 = arith.constant 0 : i32
    %c0_i32_0 = arith.constant 0 : i32
    %c0_i32_1 = arith.constant 0 : i32
    return %c0_i32, %c0_i32_0 : i32, i32
  }
  func.func @transform_17(%arg0: i32) -> (i32, i32) {
    %c0_i32 = arith.constant 0 : i32
    %c0_i32_0 = arith.constant 0 : i32
    %c0_i32_1 = arith.constant 0 : i32
    return %c0_i32, %c0_i32_0 : i32, i32
  }
  func.func @transform_18(%arg0: i32) -> (i32, i32) {
    %c0_i32 = arith.constant 0 : i32
    %c0_i32_0 = arith.constant 0 : i32
    %c0_i32_1 = arith.constant 0 : i32
    return %c0_i32, %c0_i32_0 : i32, i32
  }
  func.func @transform_19(%arg0: i32) -> (i32, i32) {
    %c0_i32 = arith.constant 0 : i32
    %c0_i32_0 = arith.constant 0 : i32
    %c0_i32_1 = arith.constant 0 : i32
    return %c0_i32, %c0_i32_0 : i32, i32
  }
  func.func @transform_20(%arg0: i32) -> (i32, i32) {
    %c0_i32 = arith.constant 0 : i32
    %c0_i32_0 = arith.constant 0 : i32
    %c0_i32_1 = arith.constant 0 : i32
    return %c0_i32, %c0_i32_0 : i32, i32
  }
  func.func @transform_21(%arg0: i32) -> (i32, i32) {
    %c0_i32 = arith.constant 0 : i32
    %c0_i32_0 = arith.constant 0 : i32
    %c0_i32_1 = arith.constant 0 : i32
    return %c0_i32, %c0_i32_0 : i32, i32
  }
}

</mosaic_0001>

<bundles_post_ra>
// kernel: gnn_layer_forward.1
= control target key start
LH: loop header
LB: loop body
LE: loop exit
PB: predicated region body
PF: predicated region fallthrough
CT: control target
= control target key end

     0   :  { %s3230_s0 = inlined_call_operand.vmem [shape: f32[16,128], index: 0, kind: input, shape index: {}]   ;;  %s3231_s1 = inlined_call_operand.vmem [shape: f32[32,128], index: 1, kind: input, shape index: {}]   ;;  %s3232_s2 = inlined_call_operand.vmem [shape: f32[1,32], index: 2, kind: input, shape index: {}]   ;;  %s3233_s3 = inlined_call_operand.vmem [shape: s32[32,1], index: 3, kind: input, shape index: {}]   ;;  %s3234_s4 = inlined_call_operand.vmem [shape: s32[32,1], index: 4, kind: input, shape index: {}]   ;;  %s3235_s5 = inlined_call_operand.vmem [shape: s32[1,32], index: 5, kind: input, shape index: {}]   ;;  %s3236_s6 = inlined_call_operand.hbm [shape: f32[128,384], index: 6, kind: input, shape index: {}]   ;;  %s3237_s7 = inlined_call_operand.vmem [shape: f32[128,128], index: 7, kind: input, shape index: {}]   ;;  %s3238_s8 = inlined_call_operand.vmem [shape: f32[1,128], index: 8, kind: input, shape index: {}]   ;;  %s3239_s9 = inlined_call_operand.hbm [shape: f32[128,128], index: 9, kind: input, shape index: {}]   ;;  %s3240_s10 = inlined_call_operand.vmem [shape: f32[1,128], index: 10, kind: input, shape index: {}]   ;;  %s3241_s11 = inlined_call_operand.vmem [shape: f32[1,128], index: 11, kind: input, shape index: {}]   ;;  %s3242_s12 = inlined_call_operand.hbm [shape: f32[128,128], index: 12, kind: input, shape index: {}]   ;;  %s3243_s13 = inlined_call_operand.vmem [shape: f32[1,128], index: 13, kind: input, shape index: {}]   ;;  %s3244_s14 = inlined_call_operand.hbm [shape: f32[128,128], index: 14, kind: input, shape index: {}]   ;;  %s3245_s15 = inlined_call_operand.hbm [shape: f32[128,128], index: 15, kind: input, shape index: {}]   ;;  %s3246_s16 = inlined_call_operand.vmem [shape: f32[1,128], index: 16, kind: input, shape index: {}]   ;;  %s3247_s17 = inlined_call_operand.hbm [shape: f32[128,128], index: 17, kind: input, shape index: {}]   ;;  %s3248_s18 = inlined_call_operand.vmem [shape: f32[1,128], index: 18, kind: input, shape index: {}]   ;;  %s3249_s19 = inlined_call_operand.vmem [shape: f32[1,128], index: 19, kind: input, shape index: {}]   ;;  %s3250_s20 = inlined_call_operand.vmem [shape: f32[1,128], index: 20, kind: input, shape index: {}]   ;;  %s3251_s21 = inlined_call_operand.hbm [shape: f32[16,128], index: 21, kind: output, shape index: {}]  }
   0x1   :  { %3257 = sst [smem:[#allocation19_spill]] %s3230_s0 }
   0x2   :  { %3258 = sst [smem:[#allocation20_spill]] %s3231_s1 }
   0x3   :  { %3259 = sst [smem:[#allocation21_spill]] %s3232_s2 }
   0x4   :  { %3260 = sst [smem:[#allocation22_spill]] %s3233_s3 }
   0x5   :  { %3261 = sst [smem:[#allocation23_spill]] %s3234_s4 }
   0x6   :  { %3262 = sst [smem:[#allocation24_spill]] %s3235_s5 }
   0x7   :  { %3263 = sst [smem:[#allocation25_spill]] %s3251_s21 }
   0x8   :  { %26 = vsyncpa [#allocation3], 0 }
   0x9   :  { %27 = vsyncpa [#allocation6], 0 }
   0xa   :  { %28 = vsyncpa [#allocation9], 0 }
   0xb   :  { %29 = vsyncpa [#allocation12], 0 }
   0xc   :  { %30 = vsyncpa [#allocation4], 0  ;;  %s2761_s2 = smov [#allocation5]   ;;  %s2597_s3 = scalar_lea.hbm %s3239_s9, 2048 }
   0xd   :  { %s64_s25 = sshll.u32 %s2761_s2, 4  ;;  %p2598_p0 = scmp.ne.s32.totalorder %s3239_s9, %s2597_s3  ;;  %s65_s25 = int_to_ptr.vmem [resolvable:$true] %s64_s25 }
   0xe   :  { %p2601_p1 = scmp.lt.u32.totalorder %s2597_s3, %s3239_s9 }
  0x10   :  { %p2603_p2 = pnand %p2601_p1, %p2598_p0 }
  0x12   :  { %2606 = shalt.err (!%p2603_p2)
}
  0x13   :  { %s2607_s30 = scalar_lea.vmem %s65_s25, 2048  ;;  %p2612_p4 = scmp.lt.s32.totalorder %s65_s25, %s65_s25 }
  0x14   :  { %p2608_p3 = scmp.ne.s32.totalorder %s65_s25, %s2607_s30  ;;  %p2613_p5 = scmp.lt.s32.totalorder %s2607_s30, %s2607_s30 }
  0x16   :  { %p2614_p6 = por %p2613_p5, %p2612_p4 }
  0x18   :  { %p2615_p7 = pnand %p2614_p6, %p2608_p3 }
  0x1a   :  { %2618 = shalt.err (!%p2615_p7)
}
  0x1b   :  { %s2762_s5 = smov 128   ;;  %s2763_s22 = smov 8  }
  0x1c   :  { %70 = dma.hbm_to_vmem [thread:$0]  %s3239_s9, 2048, %s65_s25, [#allocation6], %s2762_s5, %s2762_s5, %s2763_s22  }
  0x1d   :  { %s2764_s24 = smov [#allocation8]   ;;  %s2765_s26 = smov [#allocation2]  }
  0x1e   :  { %s94_s2 = sshll.u32 %s2764_s24, 4  ;;  %s48_s27 = sshll.u32 %s2765_s26, 4  ;;  %s95_s2 = int_to_ptr.vmem [resolvable:$true] %s94_s2  ;;  %s49_s27 = int_to_ptr.vmem [resolvable:$true] %s48_s27 }
  0x1f   :  { %s2619_s29 = scalar_lea.hbm %s3244_s14, 2048 }
  0x20   :  { %p2620_p8 = scmp.ne.s32.totalorder %s3244_s14, %s2619_s29  ;;  %p2623_p9 = scmp.lt.u32.totalorder %s2619_s29, %s3244_s14 }
  0x22   :  { %p2625_p10 = pnand %p2623_p9, %p2620_p8 }
  0x24   :  { %2628 = shalt.err (!%p2625_p10)
}
  0x25   :  { %s2629_s9 = scalar_lea.vmem %s95_s2, 2048  ;;  %p2634_p12 = scmp.lt.s32.totalorder %s95_s2, %s95_s2 }
  0x26   :  { %p2630_p11 = scmp.ne.s32.totalorder %s95_s2, %s2629_s9  ;;  %p2635_p13 = scmp.lt.s32.totalorder %s2629_s9, %s2629_s9 }
  0x28   :  { %p2636_p0 = por %p2635_p13, %p2634_p12 }
  0x2a   :  { %p2637_p1 = pnand %p2636_p0, %p2630_p11 }
  0x2c   :  { %2640 = shalt.err (!%p2637_p1)
}
  0x2d   :  { %100 = dma.hbm_to_vmem [thread:$0]  %s3244_s14, 2048, %s95_s2, [#allocation9], %s2762_s5, %s2762_s5, %s2763_s22  }
  0x2e   :  { %s2641_s24 = scalar_lea.hbm %s3236_s6, 6144 }
  0x2f   :  { %p2642_p2 = scmp.ne.s32.totalorder %s3236_s6, %s2641_s24  ;;  %p2645_p3 = scmp.lt.u32.totalorder %s2641_s24, %s3236_s6 }
  0x31   :  { %p2647_p4 = pnand %p2645_p3, %p2642_p2 }
  0x33   :  { %2650 = shalt.err (!%p2647_p4)
}
  0x34   :  { %s2651_s0 = scalar_lea.vmem %s49_s27, 6144  ;;  %p2656_p6 = scmp.lt.s32.totalorder %s49_s27, %s49_s27 }
  0x35   :  { %p2652_p5 = scmp.ne.s32.totalorder %s49_s27, %s2651_s0  ;;  %p2657_p7 = scmp.lt.s32.totalorder %s2651_s0, %s2651_s0 }
  0x37   :  { %p2658_p8 = por %p2657_p7, %p2656_p6 }
  0x39   :  { %p2659_p9 = pnand %p2658_p8, %p2652_p5 }
  0x3b   :  { %2662 = shalt.err (!%p2659_p9)
}
  0x3c   :  { %s2766_s14 = smov 384   ;;  %s2767_s2 = smov 24  }
  0x3d   :  { %54 = dma.hbm_to_vmem [thread:$0]  %s3236_s6, 6144, %s49_s27, [#allocation3], %s2766_s14, %s2766_s14, %s2767_s2  }
  0x3e   :  { %s2768_s9 = smov [#allocation7]   ;;  %s2769_s23 = smov [#allocation10]  }
  0x3f   :  { %s80_s25 = sshll.u32 %s2768_s9, 4  ;;  %s106_s1 = sshll.u32 %s2769_s23, 4  ;;  %s81_s25 = int_to_ptr.vmem [resolvable:$true] %s80_s25  ;;  %s107_s1 = int_to_ptr.vmem [resolvable:$true] %s106_s1 }
  0x40   :  { %s2663_s26 = scalar_lea.hbm %s3242_s12, 2048 }
  0x41   :  { %p2664_p10 = scmp.ne.s32.totalorder %s3242_s12, %s2663_s26  ;;  %p2667_p11 = scmp.lt.u32.totalorder %s2663_s26, %s3242_s12 }
  0x43   :  { %p2669_p12 = pnand %p2667_p11, %p2664_p10 }
  0x45   :  { %2672 = shalt.err (!%p2669_p12)
}
  0x46   :  { %s2673_s6 = scalar_lea.vmem %s81_s25, 2048  ;;  %p2678_p0 = scmp.lt.s32.totalorder %s81_s25, %s81_s25 }
  0x47   :  { %p2674_p13 = scmp.ne.s32.totalorder %s81_s25, %s2673_s6  ;;  %p2679_p1 = scmp.lt.s32.totalorder %s2673_s6, %s2673_s6 }
  0x49   :  { %p2680_p2 = por %p2679_p1, %p2678_p0 }
  0x4b   :  { %p2681_p3 = pnand %p2680_p2, %p2674_p13 }
  0x4d   :  { %2684 = shalt.err (!%p2681_p3)
}
  0x4e   :  { %86 = dma.hbm_to_vmem [thread:$0]  %s3242_s12, 2048, %s81_s25, [#allocation6], %s2762_s5, %s2762_s5, %s2763_s22  }
  0x4f   :  { %s2685_s30 = scalar_lea.hbm %s3245_s15, 2048 }
  0x50   :  { %p2686_p4 = scmp.ne.s32.totalorder %s3245_s15, %s2685_s30  ;;  %p2689_p5 = scmp.lt.u32.totalorder %s2685_s30, %s3245_s15 }
  0x52   :  { %p2691_p6 = pnand %p2689_p5, %p2686_p4 }
  0x54   :  { %2694 = shalt.err (!%p2691_p6)
}
  0x55   :  { %s2695_s26 = scalar_lea.vmem %s107_s1, 2048  ;;  %p2700_p8 = scmp.lt.s32.totalorder %s107_s1, %s107_s1 }
  0x56   :  { %p2696_p7 = scmp.ne.s32.totalorder %s107_s1, %s2695_s26  ;;  %p2701_p9 = scmp.lt.s32.totalorder %s2695_s26, %s2695_s26 }
  0x58   :  { %p2702_p10 = por %p2701_p9, %p2700_p8 }
  0x5a   :  { %p2703_p11 = pnand %p2702_p10, %p2696_p7 }
  0x5c   :  { %2706 = shalt.err (!%p2703_p11)
}
  0x5d   :  { %112 = dma.hbm_to_vmem [thread:$0]  %s3245_s15, 2048, %s107_s1, [#allocation9], %s2762_s5, %s2762_s5, %s2763_s22  }
  0x5e   :  { %s2770_s3 = smov [#allocation11]   ;;  %s2707_s6 = scalar_lea.hbm %s3247_s17, 2048 }
  0x5f   :  { %s120_s28 = sshll.u32 %s2770_s3, 4  ;;  %p2708_p12 = scmp.ne.s32.totalorder %s3247_s17, %s2707_s6  ;;  %s121_s28 = int_to_ptr.vmem [resolvable:$true] %s120_s28 }
  0x60   :  { %p2711_p13 = scmp.lt.u32.totalorder %s2707_s6, %s3247_s17 }
  0x62   :  { %p2713_p0 = pnand %p2711_p13, %p2708_p12 }
  0x64   :  { %2716 = shalt.err (!%p2713_p0)
}
  0x65   :  { %s2717_s30 = scalar_lea.vmem %s121_s28, 2048  ;;  %p2722_p2 = scmp.lt.s32.totalorder %s121_s28, %s121_s28 }
  0x66   :  { %p2718_p1 = scmp.ne.s32.totalorder %s121_s28, %s2717_s30  ;;  %p2723_p3 = scmp.lt.s32.totalorder %s2717_s30, %s2717_s30 }
  0x68   :  { %p2724_p4 = por %p2723_p3, %p2722_p2 }
  0x6a   :  { %p2725_p5 = pnand %p2724_p4, %p2718_p1 }
  0x6c   :  { %2728 = shalt.err (!%p2725_p5)
}
  0x6d   :  { %126 = dma.hbm_to_vmem [thread:$0]  %s3247_s17, 2048, %s121_s28, [#allocation12], %s2762_s5, %s2762_s5, %s2763_s22  }
  0x6e   :  { %2751 = dma.done.wait [#allocation3], 6144  }
  0x6f   :  { %2752 = vsyncadd [#allocation3], 4294961152 }
  0x70   :  { %2753 = dma.done.wait [#allocation6], 4096  }
  0x71   :  { %2754 = vsyncadd [#allocation6], 4294963200 }
  0x72   :  { %2755 = dma.done.wait [#allocation9], 4096  }
  0x73   :  { %2756 = vsyncadd [#allocation9], 4294963200 }
  0x74   :  { %2757 = dma.done.wait [#allocation12], 2048  }
  0x75   :  { %2758 = vsyncadd [#allocation12], 4294965248  ;;  %v2771_v0 = vmov 0.0   ;;  %v2772_v1 = vmov 0   ;;  %v154_v2 = vld [vmem:[#allocation2 + $0x8] sm:$0xff]  ;;  %v157_v3 = vld [vmem:[#allocation2 + $0x20] sm:$0xff] }
  0x76   :  { %265 = vmatprep.mubr.f32.mxu0 %v2771_v0  ;;  %2521 = vset.pattern.permute.xlu0 %v2772_v1  ;;  %v155_v4 = vld [vmem:[#allocation2 + $0x10] sm:$0xff]  ;;  %v2214_v5 = vpack.c.bf16 %v157_v3, %v154_v2  ;;  %v158_v6 = vld [vmem:[#allocation2 + $0x28] sm:$0xff]  ;;  %v153_v7 = vld [vmem:[#allocation2] sm:$0xff]  ;;  %s3264_s23 = sld [smem:[#allocation19_spill]]  ;;  %s3265_s26 = sld [smem:[#allocation22_spill]]  ;;  %vm560_vm0 = vcmask 130048  }
  0x77   :  { %2522 = vset.pattern.permute.xlu1 %v2772_v1  ;;  %v156_v8 = vld [vmem:[#allocation2 + $0x18] sm:$0xff]  ;;  %v2246_v9 = vpack.c.bf16 %v158_v6, %v155_v4  ;;  %v163_v12 = vld [vmem:[#allocation2 + $0x50] sm:$0xff]  ;;  %v161_v13 = vld [vmem:[#allocation2 + $0x40] sm:$0xff]  ;;  %s3266_s14 = sld [smem:[#allocation23_spill]]  ;;  %s3267_s15 = sld [smem:[#allocation20_spill]] }
  0x78   :  { %v2216_v10 = vpack.c.bf16 %v156_v8, %v153_v7  ;;  %v160_v11 = vld [vmem:[#allocation2 + $0x38] sm:$0xff]  ;;  %2215 = vmatprep.subr.bf16.mxu0 %v2214_v5  ;;  %v159_v16 = vld [vmem:[#allocation2 + $0x30] sm:$0xff]  ;;  %v162_v17 = vld [vmem:[#allocation2 + $0x48] sm:$0xff]  ;;  %s3268_s25 = sld [smem:[#allocation21_spill]]  ;;  %s3269_s28 = sld [smem:[#allocation24_spill]] }
  0x79   :  { %v2218_v14 = vpack.c.bf16 %v163_v12, %v160_v11  ;;  %v164_v15 = vld [vmem:[#allocation2 + $0x58] sm:$0xff]  ;;  %2247 = vmatprep.subr.bf16.mxu1 %v2246_v9  ;;  %v2220_v19 = vpack.c.bf16 %v162_v17, %v159_v16  ;;  %v166_v20 = vld [vmem:[#allocation2 + $0x68] sm:$0xff]  ;;  %v169_v21 = vld [vmem:[#allocation2 + $0x80] sm:$0xff] }
  0x7a   :  { %2217 = vmatpush1.bf16.msra.mxu0 %v2216_v10  ;;  %v2250_v18 = vpack.c.bf16 %v164_v15, %v161_v13  ;;  %v167_v22 = vld [vmem:[#allocation2 + $0x70] sm:$0xff]  ;;  %2249 = vmatpush3.bf16.msra.mxu1 %v2246_v9  ;;  %v2222_v23 = vpack.c.bf16 %v169_v21, %v166_v20  ;;  %v170_v24 = vld [vmem:[#allocation2 + $0x88] sm:$0xff]  ;;  %v165_v25 = vld [vmem:[#allocation2 + $0x60] sm:$0xff] }
  0x7b   :  { %2219 = vmatprep.subr.bf16.mxu0 %v2218_v14  ;;  %v168_v26 = vld [vmem:[#allocation2 + $0x78] sm:$0xff]  ;;  %v2254_v27 = vpack.c.bf16 %v170_v24, %v167_v22  ;;  %v175_v29 = vld [vmem:[#allocation2 + $0xb0] sm:$0xff]  ;;  %v173_v30 = vld [vmem:[#allocation2 + $0xa0] sm:$0xff] }
  0x7c   :  { %2251 = vmatprep.subr.bf16.mxu1 %v2250_v18  ;;  %v172_v28 = vld [vmem:[#allocation2 + $0x98] sm:$0xff]  ;;  %v2224_v32 = vpack.c.bf16 %v168_v26, %v165_v25  ;;  %v171_v34 = vld [vmem:[#allocation2 + $0x90] sm:$0xff]  ;;  %v174_v35 = vld [vmem:[#allocation2 + $0xa8] sm:$0xff] }
  0x7d   :  { %v176_v31 = vld [vmem:[#allocation2 + $0xb8] sm:$0xff]  ;;  %v2226_v33 = vpack.c.bf16 %v175_v29, %v172_v28  ;;  %v178_v37 = vld [vmem:[#allocation2 + $0xc8] sm:$0xff]  ;;  %v181_v38 = vld [vmem:[#allocation2 + $0xe0] sm:$0xff]  ;;  %v2228_v41 = vpack.c.bf16 %v174_v35, %v171_v34 }
  0x7e   :  { %2221 = vmatpush1.bf16.msra.mxu0 %v2220_v19  ;;  %2253 = vmatpush3.bf16.msra.mxu1 %v2250_v18  ;;  %v2258_v36 = vpack.c.bf16 %v176_v31, %v173_v30  ;;  %v179_v39 = vld [vmem:[#allocation2 + $0xd0] sm:$0xff]  ;;  %v182_v40 = vld [vmem:[#allocation2 + $0xe8] sm:$0xff]  ;;  %v2230_v42 = vpack.c.bf16 %v181_v38, %v178_v37  ;;  %v177_v43 = vld [vmem:[#allocation2 + $0xc0] sm:$0xff] }
  0x7f   :  { %2223 = vmatprep.subr.bf16.mxu0 %v2222_v23  ;;  %2255 = vmatprep.subr.bf16.mxu1 %v2254_v27  ;;  %v180_v44 = vld [vmem:[#allocation2 + $0xd8] sm:$0xff]  ;;  %v2262_v45 = vpack.c.bf16 %v182_v40, %v179_v39  ;;  %v187_v47 = vld [vmem:[#allocation2 + $0x110] sm:$0xff]  ;;  %v185_v48 = vld [vmem:[#allocation2 + $0x100] sm:$0xff] }
  0x80   :  { %v184_v46 = vld [vmem:[#allocation2 + $0xf8] sm:$0xff]  ;;  %v2232_v50 = vpack.c.bf16 %v180_v44, %v177_v43  ;;  %v151_v51 = vld [vmem:[%s3264_s23] sm:$0xff]  ;;  %v183_v54 = vld [vmem:[#allocation2 + $0xf0] sm:$0xff] }
  0x81   :  { %v188_v49 = vld [vmem:[#allocation2 + $0x118] sm:$0xff]  ;;  %v490_v52 = vld [vmem:[%s3265_s26] sm:$0xff]  ;;  %v2234_v53 = vpack.c.bf16 %v187_v47, %v184_v46  ;;  %v186_v55 = vld [vmem:[#allocation2 + $0x108] sm:$0xff]  ;;  %1954 = vmatprep.mubr.f32.mxu1 %v151_v51 }
  0x82   :  { %2225 = vmatpush1.bf16.msra.mxu0 %v2224_v32  ;;  %2257 = vmatpush3.bf16.msra.mxu1 %v2254_v27  ;;  %v492_v56 = vld [vmem:[%s3265_s26 + $0x10] sm:$0xff]  ;;  %v2266_v57 = vpack.c.bf16 %v188_v49, %v185_v48  ;;  %v190_v58 = vld [vmem:[#allocation2 + $0x128] sm:$0xff]  ;;  %v193_v59 = vld [vmem:[#allocation2 + $0x140] sm:$0xff]  ;;  %v2236_v62 = vpack.c.bf16 %v186_v55, %v183_v54 }
  0x83   :  { %2227 = vmatprep.subr.bf16.mxu0 %v2226_v33  ;;  %2259 = vmatprep.subr.bf16.mxu1 %v2258_v36  ;;  %v191_v60 = vld [vmem:[#allocation2 + $0x130] sm:$0xff]  ;;  %v194_v61 = vld [vmem:[#allocation2 + $0x148] sm:$0xff]  ;;  %v493_v1 = vld [vmem:[%s3265_s26 + $0x18] sm:$0xff]  ;;  %v2238_v2 = vpack.c.bf16 %v193_v59, %v190_v58 }
  0x84   :  { %495 = vperm.xlu0 %2521, %v490_v52   ;;  %501 = vperm.xlu1 %2522, %v492_v56   ;;  %v491_v63 = vld [vmem:[%s3265_s26 + $0x8] sm:$0xff]  ;;  %v189_v3 = vld [vmem:[#allocation2 + $0x120] sm:$0xff]  ;;  %v192_v4 = vld [vmem:[#allocation2 + $0x138] sm:$0xff]  ;;  %v2270_v5 = vpack.c.bf16 %v194_v61, %v191_v60 }
  0x85   :  { %v196_v6 = vld [vmem:[#allocation2 + $0x158] sm:$0xff]  ;;  %v199_v7 = vld [vmem:[#allocation2 + $0x170] sm:$0xff]  ;;  %v197_v8 = vld [vmem:[#allocation2 + $0x160] sm:$0xff]  ;;  %v2240_v10 = vpack.c.bf16 %v192_v4, %v189_v3 }
  0x86   :  { %2229 = vmatpush1.bf16.msra.mxu0 %v2228_v41  ;;  %2261 = vmatpush3.bf16.msra.mxu1 %v2258_v36  ;;  %v200_v9 = vld [vmem:[#allocation2 + $0x178] sm:$0xff]  ;;  %v518_v11 = vld [vmem:[%s3266_s14] sm:$0xff]  ;;  %v519_v12 = vld [vmem:[%s3266_s14 + $0x8] sm:$0xff]  ;;  %v2242_v13 = vpack.c.bf16 %v199_v7, %v196_v6  ;;  %v488_v41 = vlaneseq }
  0x87   :  { %2231 = vmatprep.subr.bf16.mxu0 %v2230_v42  ;;  %2263 = vmatprep.subr.bf16.mxu1 %v2262_v45  ;;  %v195_v14 = vld [vmem:[#allocation2 + $0x150] sm:$0xff]  ;;  %v198_v15 = vld [vmem:[#allocation2 + $0x168] sm:$0xff]  ;;  %v2274_v16 = vpack.c.bf16 %v200_v9, %v197_v8  ;;  %v521_v19 = vld [vmem:[%s3266_s14 + $0x18] sm:$0xff] }
  0x88   :  { %498 = vperm.xlu0 %2521, %v491_v63   ;;  %504 = vperm.xlu1 %2522, %v493_v1   ;;  %v2244_v17 = vpack.c.bf16 %v198_v15, %v195_v14  ;;  %v520_v18 = vld [vmem:[%s3266_s14 + $0x10] sm:$0xff]  ;;  %v152_v20 = vld [vmem:[%s3264_s23 + $0x8] sm:$0xff]  ;;  %v376_v21 = vld [vmem:[#allocation7] sm:$0xff] }
  0x89   :  { %v377_v22 = vld [vmem:[#allocation7 + $0x8] sm:$0xff]  ;;  %v378_v24 = vld [vmem:[#allocation7 + $0x10] sm:$0xff]  ;;  %v379_v25 = vld [vmem:[#allocation7 + $0x18] sm:$0xff] }
  0x8a   :  { %2233 = vmatpush1.bf16.msra.mxu0 %v2232_v50  ;;  %2265 = vmatpush3.bf16.msra.mxu1 %v2262_v45  ;;  %v2278_v23 = vpack.c.bf16 %v377_v22, %v376_v21  ;;  %v2282_v26 = vpack.c.bf16 %v379_v25, %v378_v24  ;;  %v380_v27 = vld [vmem:[#allocation7 + $0x20] sm:$0xff]  ;;  %v381_v28 = vld [vmem:[#allocation7 + $0x28] sm:$0xff]  ;;  %v382_v30 = vld [vmem:[#allocation7 + $0x30] sm:$0xff]  ;;  %v3010_v45 = vand.u32 127, %v488_v41 }
  0x8b   :  { %2235 = vmatprep.subr.bf16.mxu0 %v2234_v53  ;;  %2267 = vmatprep.subr.bf16.mxu1 %v2266_v57  ;;  %v2286_v29 = vpack.c.bf16 %v381_v28, %v380_v27  ;;  %v383_v31 = vld [vmem:[#allocation7 + $0x38] sm:$0xff]  ;;  %v384_v33 = vld [vmem:[#allocation7 + $0x40] sm:$0xff]  ;;  %v385_v34 = vld [vmem:[#allocation7 + $0x48] sm:$0xff] }
  0x8c   :  { %523 = vperm.xlu0 %2521, %v518_v11   ;;  %526 = vperm.xlu1 %2522, %v519_v12   ;;  %v2290_v32 = vpack.c.bf16 %v383_v31, %v382_v30  ;;  %v2294_v35 = vpack.c.bf16 %v385_v34, %v384_v33  ;;  %v386_v36 = vld [vmem:[#allocation7 + $0x50] sm:$0xff]  ;;  %v387_v37 = vld [vmem:[#allocation7 + $0x58] sm:$0xff]  ;;  %v388_v39 = vld [vmem:[#allocation7 + $0x60] sm:$0xff] }
  0x8d   :  { %v2298_v38 = vpack.c.bf16 %v387_v37, %v386_v36  ;;  %v389_v40 = vld [vmem:[#allocation7 + $0x68] sm:$0xff]  ;;  %v390_v43 = vld [vmem:[#allocation7 + $0x70] sm:$0xff]  ;;  %v391_v44 = vld [vmem:[#allocation7 + $0x78] sm:$0xff] }
  0x8e   :  { %2237 = vmatpush1.bf16.msra.mxu0 %v2236_v62  ;;  %2269 = vmatpush3.bf16.msra.mxu1 %v2266_v57  ;;  %v2302_v42 = vpack.c.bf16 %v389_v40, %v388_v39  ;;  %v2306_v46 = vpack.c.bf16 %v391_v44, %v390_v43  ;;  %v1715_v49 = vld [vmem:[%s3241_s11] ss:$0 sm:$0xff]  ;;  %v845_v58 = vld [vmem:[%s3237_s7 + $0x8] sm:$0xff]  ;;  %v846_v3 = vld [vmem:[%s3237_s7 + $0x10] sm:$0xff] }
  0x8f   :  { %2239 = vmatprep.subr.bf16.mxu0 %v2238_v2  ;;  %2271 = vmatprep.subr.bf16.mxu1 %v2270_v5  ;;  %v844_v57 = vld [vmem:[%s3237_s7] sm:$0xff]  ;;  %v847_v4 = vld [vmem:[%s3237_s7 + $0x18] sm:$0xff]  ;;  %v849_v11 = vld [vmem:[%s3237_s7 + $0x28] sm:$0xff] }
  0x90   :  { %529 = vperm.xlu0 %2521, %v520_v18   ;;  %532 = vperm.xlu1 %2522, %v521_v19   ;;  %v2322_v1 = vpack.c.bf16 %v845_v58, %v844_v57  ;;  %v2326_v8 = vpack.c.bf16 %v847_v4, %v846_v3  ;;  %v840_v14 = vld [vmem:[%s3267_s15] sm:$0xff]  ;;  %v850_v15 = vld [vmem:[%s3237_s7 + $0x30] sm:$0xff]  ;;  %v857_v30 = vld [vmem:[%s3237_s7 + $0x68] sm:$0xff] }
  0x91   :  { %v852_v22 = vld [vmem:[%s3237_s7 + $0x40] sm:$0xff]  ;;  %v854_v25 = vld [vmem:[%s3237_s7 + $0x50] sm:$0xff]  ;;  %v859_v36 = vld [vmem:[%s3237_s7 + $0x78] sm:$0xff] }
  0x92   :  { %2241 = vmatpush1.bf16.msra.mxu0 %v2240_v10  ;;  %2273 = vmatpush3.bf16.msra.mxu1 %v2270_v5  ;;  %v848_v10 = vld [vmem:[%s3237_s7 + $0x20] sm:$0xff] }
  0x93   :  { %2243 = vmatprep.subr.bf16.mxu0 %v2242_v13  ;;  %2275 = vmatprep.subr.bf16.mxu1 %v2274_v16  ;;  %v2330_v13 = vpack.c.bf16 %v849_v11, %v848_v10 }
  0x96   :  { %2245 = vmatpush1.bf16.msra.mxu0 %v2244_v17  ;;  %2277 = vmatpush3.bf16.msra.mxu1 %v2274_v16  ;;  %v851_v16 = vld [vmem:[%s3237_s7 + $0x38] sm:$0xff] }
  0x97   :  { %2279 = vmatprep.subr.bf16.mxu0 %v2278_v23 }
  0x99   :  { %266 = vmatmul.mubr.f32.vlgmr.msra.gmra.mrb[0].mxu0 %v151_v51  ;;  %1955 = vmatmul.mubr.f32.vlgmr.msra.gmra.mrb[0].mxu1 %v152_v20 }
  0x9a   :  { %271 = vmatprep.mubr.f32.mxu0 %v2771_v0  ;;  %2281 = vmatpush3.bf16.msra.mxu0 %v2278_v23  ;;  %v853_v23 = vld [vmem:[%s3237_s7 + $0x48] sm:$0xff] }
  0x9b   :  { %2283 = vmatprep.subr.bf16.mxu0 %v2282_v26  ;;  %v2338_v24 = vpack.c.bf16 %v853_v23, %v852_v22  ;;  %v989_v22 = vld [vmem:[#allocation5 + $0x8] sm:$0xff] }
  0x9d   :  { %272 = vmatmul.mubr.f32.gmra.mrb[2].mxu0 %v152_v20  ;;  %v2334_v20 = vpack.c.bf16 %v851_v16, %v850_v15 }
  0x9e   :  { %2285 = vmatpush3.bf16.msra.mxu0 %v2282_v26  ;;  %v855_v26 = vld [vmem:[%s3237_s7 + $0x58] sm:$0xff] }
  0x9f   :  { %2287 = vmatprep.subr.bf16.mxu0 %v2286_v29  ;;  %v2342_v27 = vpack.c.bf16 %v855_v26, %v854_v25 }
  0xa2   :  { %2289 = vmatpush3.bf16.msra.mxu0 %v2286_v29  ;;  %v856_v29 = vld [vmem:[%s3237_s7 + $0x60] sm:$0xff] }
  0xa3   :  { %2291 = vmatprep.subr.bf16.mxu0 %v2290_v32  ;;  %v2346_v33 = vpack.c.bf16 %v857_v30, %v856_v29  ;;  %v991_v29 = vld [vmem:[#allocation5 + $0x18] sm:$0xff] }
  0xa6   :  { %2293 = vmatpush3.bf16.msra.mxu0 %v2290_v32 }
  0xa7   :  { %2295 = vmatprep.subr.bf16.mxu0 %v2294_v35 }
  0xaa   :  { %2297 = vmatpush3.bf16.msra.mxu0 %v2294_v35  ;;  %v858_v35 = vld [vmem:[%s3237_s7 + $0x70] sm:$0xff] }
  0xab   :  { %2299 = vmatprep.subr.bf16.mxu0 %v2298_v38  ;;  %v2350_v43 = vpack.c.bf16 %v859_v36, %v858_v35  ;;  %v993_v35 = vld [vmem:[#allocation5 + $0x28] sm:$0xff] }
  0xae   :  { %2301 = vmatpush3.bf16.msra.mxu0 %v2298_v38 }
  0xaf   :  { %2303 = vmatprep.subr.bf16.mxu0 %v2302_v42 }
  0xb2   :  { %2305 = vmatpush3.bf16.msra.mxu0 %v2302_v42 }
  0xb3   :  { %2307 = vmatprep.subr.bf16.mxu0 %v2306_v46 }
  0xb6   :  { %2309 = vmatpush3.bf16.msra.mxu0 %v2306_v46 }
 0x103   :  { %v496_v47 = vpop.permute.xlu0 %495  ;;  %v502_v51 = vpop.permute.xlu1 %501 }
 0x104   :  { %vm506_vm1 = vcmp.eq.s32.totalorder %v496_v47, %v3010_v45  ;;  %vm508_vm3 = vcmp.eq.s32.totalorder %v502_v51, %v3010_v45  ;;  %v1718_v51 = vld [vmem:[%s3243_s13] ss:$0 sm:$0xff] }
 0x105   :  { %v3014_v48 = vsel %vm506_vm1, 1.0, %v2771_v0  ;;  %v3048_v9 = vsel %vm508_vm3, 1.0, %v2771_v0 }
 0x106   :  { %2016 = vmatprep.mubr.msk.f32.mxu1 %vm560_vm0, %v3014_v48 }
 0x107   :  { %v499_v56 = vpop.permute.xlu0 %498  ;;  %v505_v7 = vpop.permute.xlu1 %504 }
 0x108   :  { %vm507_vm2 = vcmp.eq.s32.totalorder %v499_v56, %v3010_v45  ;;  %vm509_vm4 = vcmp.eq.s32.totalorder %v505_v7, %v3010_v45 }
 0x109   :  { %v3044_v6 = vsel %vm507_vm2, 1.0, %v2771_v0  ;;  %v3060_v12 = vsel %vm509_vm4, 1.0, %v2771_v0 }
 0x10b   :  { %v524_v28 = vpop.permute.xlu0 %523  ;;  %v527_v31 = vpop.permute.xlu1 %526 }
 0x10c   :  { %vm534_vm5 = vcmp.eq.s32.totalorder %v524_v28, %v3010_v45  ;;  %vm535_vm6 = vcmp.eq.s32.totalorder %v527_v31, %v3010_v45  ;;  %v990_v28 = vld [vmem:[#allocation5 + $0x10] sm:$0xff] }
 0x10d   :  { %v1725_v39 = vsel %vm534_vm5, 1.0, %v2771_v0  ;;  %v1726_v44 = vsel %vm535_vm6, 1.0, %v2771_v0 }
 0x10f   :  { %v530_v40 = vpop.permute.xlu0 %529  ;;  %v533_v42 = vpop.permute.xlu1 %532 }
 0x110   :  { %vm536_vm7 = vcmp.eq.s32.totalorder %v530_v40, %v3010_v45  ;;  %vm537_vm8 = vcmp.eq.s32.totalorder %v533_v42, %v3010_v45  ;;  %v843_v45 = vld [vmem:[%s3267_s15 + $0x18] sm:$0xff]  ;;  %v994_v40 = vld [vmem:[#allocation5 + $0x30] sm:$0xff] }
 0x111   :  { %v1727_v46 = vsel %vm536_vm7, 1.0, %v2771_v0  ;;  %v1728_v47 = vsel %vm537_vm8, 1.0, %v2771_v0  ;;  %v995_v42 = vld [vmem:[#allocation5 + $0x38] sm:$0xff]  ;;  %vm1241_vm8 = vcmask 261120  }
 0x16c   :  { %v267_v50 = vpop.f32.mrb[0].mxu0  ;;  %v1956_v52 = vpop.f32.mrb[0].mxu1 }
 0x16d   :  { %v269_v53 = vpop.f32.mrb[1].mxu0  ;;  %v3021_v54 = vadd.f32 %v1956_v52, %v1715_v49  ;;  %v344_v55 = vpop.f32.mrb[1].mxu1 }
 0x16e   :  { %v3029_v59 = vadd.f32 %v1715_v49, %v344_v55  ;;  %v841_v49 = vld [vmem:[%s3267_s15 + $0x8] sm:$0xff] }
 0x16f   :  { %v1717_v60 = vmul.f32 -1.442695, %v3021_v54 }
 0x170   :  { %v273_v61 = vpop.f32.mrb[2].mxu0  ;;  %v1716_v62 = vmul.f32 -1.442695, %v3029_v59 }
 0x171   :  { %v2318_v63 = vpack.c.bf16 %v273_v61, %v267_v50  ;;  %v275_v2 = vpop.f32.mrb[3].mxu0  ;;  %2523 = vpow2.f32 %v1717_v60  ;;  %v842_v50 = vld [vmem:[%s3267_s15 + $0x10] sm:$0xff] }
 0x172   :  { %v3041_v5 = vpack.c.bf16 %v275_v2, %v269_v53  ;;  %2525 = vpow2.f32 %v1716_v62 }
 0x173   :  { %2319 = vmatprep.subr.bf16.mxu1 %v2318_v63 }
 0x174   :  { %2321 = vmatpush3.bf16.msra.mxu1 %v2318_v63  ;;  %2311 = vmatprep.subr.bf16.mxu0 %v3041_v5  ;;  %v1744_v63 = vld [vmem:[%s3238_s8] ss:$0 sm:$0xff] }
 0x175   :  { %2323 = vmatprep.subr.bf16.mxu1 %v2322_v1 }
 0x177   :  { %2017 = vmatmul.mubr.msk.f32.vlgmr.msra.gmra.mrb[2].mxu1 %vm560_vm0, %v3044_v6 }
 0x178   :  { %2325 = vmatpush3.bf16.msra.mxu1 %v2322_v1  ;;  %2019 = vmatprep.mubr.msk.f32.mxu1 %vm560_vm0, %v3048_v9 }
 0x179   :  { %2327 = vmatprep.subr.bf16.mxu1 %v2326_v8 }
 0x17b   :  { %2020 = vmatmul.mubr.msk.f32.gmra.mrb[4].mxu1 %vm560_vm0, %v3060_v12  ;;  %v2524_v17 = vpop.eup %2523 }
 0x17c   :  { %2329 = vmatpush3.bf16.msra.mxu1 %v2326_v8  ;;  %2054 = vmatprep.mubr.f32.mxu1 %v840_v14  ;;  %v2526_v18 = vpop.eup %2525  ;;  %v369_v19 = vadd.f32 1.0, %v2524_v17 }
 0x17d   :  { %2331 = vmatprep.subr.bf16.mxu1 %v2330_v13  ;;  %v368_v21 = vadd.f32 1.0, %v2526_v18 }
 0x17e   :  { %2527 = vrcp.f32 %v369_v19 }
 0x17f   :  { %2529 = vrcp.f32 %v368_v21  ;;  %v988_v21 = vld [vmem:[#allocation5] sm:$0xff] }
 0x180   :  { %2333 = vmatpush3.bf16.msra.mxu1 %v2330_v13 }
 0x181   :  { %2335 = vmatprep.subr.bf16.mxu1 %v2334_v20 }
 0x184   :  { %2337 = vmatpush3.bf16.msra.mxu1 %v2334_v20 }
 0x185   :  { %2339 = vmatprep.subr.bf16.mxu1 %v2338_v24 }
 0x188   :  { %2341 = vmatpush3.bf16.msra.mxu1 %v2338_v24  ;;  %v2528_v32 = vpop.eup %2527 }
 0x189   :  { %2343 = vmatprep.subr.bf16.mxu1 %v2342_v27  ;;  %v2530_v34 = vpop.eup %2529  ;;  %v375_v38 = vmul.f32 %v2528_v32, %v3021_v54 }
 0x18a   :  { %v374_v37 = vmul.f32 %v2530_v34, %v3029_v59  ;;  %v992_v34 = vld [vmem:[#allocation5 + $0x20] sm:$0xff] }
 0x18c   :  { %2345 = vmatpush3.bf16.msra.mxu1 %v2342_v27  ;;  %1989 = vmatprep.mubr.f32.mxu0 %v374_v37  ;;  %v2354_v27 = vpack.c.bf16 %v989_v22, %v988_v21  ;;  %v2775_v22 = vmov 2475754826  }
 0x18d   :  { %2347 = vmatprep.subr.bf16.mxu1 %v2346_v33  ;;  %1990 = vmatmul.mubr.f32.vlgmr.msra.gmra.mrb[4].mxu0 %v375_v38  ;;  %v2362_v38 = vpack.c.bf16 %v993_v35, %v992_v34 }
 0x18e   :  { %2313 = vmatpush3.bf16.msra.mxu0 %v3041_v5  ;;  %1996 = vmatprep.mubr.msk.f32.mxu0 %vm560_vm0, %v1725_v39 }
 0x190   :  { %2349 = vmatpush3.bf16.msra.mxu1 %v2346_v33  ;;  %v2358_v33 = vpack.c.bf16 %v991_v29, %v990_v28 }
 0x191   :  { %2351 = vmatprep.subr.bf16.mxu1 %v2350_v43  ;;  %1997 = vmatmul.mubr.msk.f32.vlgmr.msra.gmra.mrb[6].mxu0 %vm560_vm0, %v1726_v44  ;;  %v997_v44 = vld [vmem:[#allocation5 + $0x48] sm:$0xff] }
 0x192   :  { %1999 = vmatprep.mubr.msk.f32.mxu0 %vm560_vm0, %v1727_v46 }
 0x194   :  { %2353 = vmatpush3.bf16.msra.mxu1 %v2350_v43  ;;  %v2366_v43 = vpack.c.bf16 %v995_v42, %v994_v40 }
 0x195   :  { %2000 = vmatmul.mubr.msk.f32.gmra.mrb[8].mxu0 %vm560_vm0, %v1728_v47 }
 0x196   :  { %2006 = vmatprep.mubr.msk.f32.mxu0 %vm560_vm0, %v3014_v48 }
 0x197   :  { %2055 = vmatmul.mubr.f32.vlgmr.msra.gmra.mrb[2].mxu1 %v841_v49  ;;  %v998_v49 = vld [vmem:[#allocation5 + $0x50] sm:$0xff] }
 0x198   :  { %2057 = vmatprep.mubr.f32.mxu1 %v842_v50  ;;  %v999_v50 = vld [vmem:[#allocation5 + $0x58] sm:$0xff] }
 0x19b   :  { %2058 = vmatmul.mubr.f32.gmra.mrb[4].mxu1 %v843_v45 }
 0x260   :  { %v1991_v52 = vpop.f32.mrb[4].mxu0 }
 0x261   :  { %v471_v53 = vadd.f32 %v1991_v52, %v1718_v51  ;;  %v465_v54 = vpop.f32.mrb[5].mxu0 }
 0x262   :  { %v466_v55 = vadd.f32 %v1718_v51, %v465_v54  ;;  %v1001_v54 = vld [vmem:[#allocation5 + $0x68] sm:$0xff] }
 0x263   :  { %v1720_v56 = vmul.f32 -1.442695, %v471_v53 }
 0x264   :  { %v1719_v57 = vmul.f32 -1.442695, %v466_v55  ;;  %v1998_v58 = vpop.f32.mrb[6].mxu0 }
 0x265   :  { %2531 = vpow2.f32 %v1720_v56  ;;  %v639_v48 = vpop.f32.mrb[7].mxu0 }
 0x266   :  { %2533 = vpow2.f32 %v1719_v57  ;;  %v1002_v57 = vld [vmem:[#allocation5 + $0x70] sm:$0xff] }
 0x268   :  { %v2001_v59 = vpop.f32.mrb[8].mxu0 }
 0x269   :  { %v649_v61 = vpop.f32.mrb[9].mxu0 }
 0x26a   :  { %v2056_v60 = vpop.f32.mrb[2].mxu1 }
 0x26b   :  { %v2490_v62 = vadd.f32 %v2056_v60, %v1998_v58  ;;  %v926_v1 = vpop.f32.mrb[3].mxu1  ;;  %v1003_v58 = vld [vmem:[#allocation5 + $0x78] sm:$0xff] }
 0x26c   :  { %v2491_v2 = vadd.f32 %v926_v1, %v639_v48  ;;  %v2382_v48 = vpack.c.bf16 %v1003_v58, %v1002_v57 }
 0x26d   :  { %v3135_v24 = vadd.f32 %v2490_v62, %v1744_v63 }
 0x26e   :  { %v956_v3 = vadd.f32 %v2491_v2, %v1744_v63  ;;  %v2059_v4 = vpop.f32.mrb[4].mxu1  ;;  %v1128_v2 = vld [vmem:[%s3268_s25] sm:$0x1] }
 0x26f   :  { %v2492_v5 = vadd.f32 %v2059_v4, %v2001_v59  ;;  %v936_v7 = vpop.f32.mrb[5].mxu1  ;;  %v2532_v8 = vpop.eup %2531  ;;  %v1746_v30 = vmul.f32 -1.442695, %v3135_v24 }
 0x270   :  { %v1745_v10 = vmul.f32 -1.442695, %v956_v3  ;;  %v2493_v11 = vadd.f32 %v936_v7, %v649_v61  ;;  %v2534_v13 = vpop.eup %2533  ;;  %v481_v14 = vadd.f32 1.0, %v2532_v8 }
 0x271   :  { %v480_v15 = vadd.f32 1.0, %v2534_v13  ;;  %v3142_v31 = vadd.f32 %v2492_v5, %v1744_v63 }
 0x272   :  { %2535 = vpow2.f32 %v1745_v10  ;;  %v3137_v25 = vadd.f32 %v2493_v11, %v1744_v63 }
 0x273   :  { %2537 = vrcp.f32 %v481_v14  ;;  %v1748_v36 = vmul.f32 -1.442695, %v3142_v31 }
 0x274   :  { %2539 = vrcp.f32 %v480_v15  ;;  %v1747_v32 = vmul.f32 -1.442695, %v3137_v25  ;;  %v2773_v15 = vmov 2102212464  }
 0x27c   :  { %v2536_v16 = vpop.eup %2535 }
 0x27d   :  { %v2538_v17 = vpop.eup %2537  ;;  %v972_v18 = vadd.f32 1.0, %v2536_v16 }
 0x27e   :  { %v2540_v19 = vpop.eup %2539  ;;  %v3131_v20 = vmul.f32 %v2538_v17, %v471_v53  ;;  %v2374_v53 = vpack.c.bf16 %v999_v50, %v998_v49 }
 0x27f   :  { %v3133_v23 = vmul.f32 %v2540_v19, %v466_v55  ;;  %2541 = vrcp.f32 %v972_v18  ;;  %v2774_v19 = vmov 683565275  }
 0x280   :  { %2543 = vpow2.f32 %v1746_v30 }
 0x281   :  { %v2314_v26 = vpack.c.bf16 %v3131_v20, %v3133_v23  ;;  %2545 = vpow2.f32 %v1747_v32  ;;  %v2777_v32 = vmov 920167782  }
 0x282   :  { %2547 = vpow2.f32 %v1748_v36 }
 0x283   :  { %2315 = vmatprep.subr.bf16.mxu0 %v2314_v26 }
 0x284   :  { %2317 = vmatpush3.bf16.msra.mxu0 %v2314_v26  ;;  %v2776_v26 = vmov 2131351028  }
 0x285   :  { %2355 = vmatprep.subr.bf16.mxu0 %v2354_v27 }
 0x287   :  { %2007 = vmatmul.mubr.msk.f32.vlgmr.msra.gmra.mrb[10].mxu0 %vm560_vm0, %v3044_v6  ;;  %v996_v6 = vld [vmem:[#allocation5 + $0x40] sm:$0xff] }
 0x288   :  { %2009 = vmatprep.mubr.msk.f32.mxu0 %vm560_vm0, %v3048_v9  ;;  %2357 = vmatpush3.bf16.msra.mxu0 %v2354_v27  ;;  %v2370_v9 = vpack.c.bf16 %v997_v44, %v996_v6 }
 0x289   :  { %v2542_v37 = vpop.eup %2541  ;;  %2359 = vmatprep.subr.bf16.mxu0 %v2358_v33 }
 0x28a   :  { %v984_v39 = vmul.f32 %v2542_v37, %v956_v3  ;;  %v2544_v46 = vpop.eup %2543  ;;  %v3158_v3 = vmul.f32 1.5707964, %v1128_v2 }
 0x28b   :  { %2010 = vmatmul.mubr.msk.f32.gmra.mrb[12].mxu0 %vm560_vm0, %v3060_v12  ;;  %v2546_v47 = vpop.eup %2545  ;;  %v973_v45 = vadd.f32 1.0, %v2544_v46  ;;  %v1000_v12 = vld [vmem:[#allocation5 + $0x60] sm:$0xff] }
 0x28c   :  { %2361 = vmatpush3.bf16.msra.mxu0 %v2358_v33  ;;  %2092 = vmatprep.mubr.f32.mxu0 %v984_v39  ;;  %v2548_v51 = vpop.eup %2547  ;;  %v974_v52 = vadd.f32 1.0, %v2546_v47  ;;  %v2378_v56 = vpack.c.bf16 %v1001_v54, %v1000_v12  ;;  %v1133_v4 = vand.u32 2139095040, %v3158_v3  ;;  %v1130_v14 = vand.u32 2147483647, %v3158_v3 }
 0x28d   :  { %2363 = vmatprep.subr.bf16.mxu0 %v2362_v38  ;;  %2549 = vrcp.f32 %v973_v45  ;;  %v975_v55 = vadd.f32 1.0, %v2548_v51  ;;  %vm1132_vm0 = vcmp.lt.s32.totalorder %v3158_v3, 0  ;;  %vm1222_vm4 = vweird.f32 %v3158_v3 }
 0x28e   :  { %2551 = vrcp.f32 %v974_v52  ;;  %v1134_v5 = vshrl.u32 %v1133_v4, 23  ;;  %v1137_v17 = vand.u32 8388607, %v1130_v14  ;;  %vm1131_vm1 = vcmp.le.f32.partialorder %v1130_v14, 0.7853982 }
 0x28f   :  { %2553 = vrcp.f32 %v975_v55  ;;  %v1729_v14 = vld [vmem:[%s3269_s28] ss:$0 sm:$0xff] }
 0x290   :  { %2365 = vmatpush3.bf16.msra.mxu0 %v2362_v38  ;;  %v1754_v7 = vadd.s32 4294967169, %v1134_v5  ;;  %v1138_v30 = vor.u32 8388608, %v1137_v17  ;;  %v2778_v38 = vmov 1326507024  }
 0x291   :  { %2367 = vmatprep.subr.bf16.mxu0 %v2366_v43 }
 0x292   :  { %v1140_v8 = vadd.s32 1, %v1754_v7  ;;  %v1178_v6 = vshll.u32 %v1138_v30, 8 }
 0x294   :  { %2369 = vmatpush3.bf16.msra.mxu0 %v2366_v43  ;;  %vm1141_vm9 = vcmp.gt.s32.totalorder %v1140_v8, 0 }
 0x295   :  { %2371 = vmatprep.subr.bf16.mxu0 %v2370_v9  ;;  %v1142_v10 = vsel %vm1141_vm9, %v1140_v8, 0 }
 0x296   :  { %v1144_v11 = vand.u32 31, %v1142_v10  ;;  %v1143_v18 = vshrl.u32 %v1142_v10, 5 }
 0x297   :  { %v2550_v59 = vpop.eup %2549 }
 0x298   :  { %2373 = vmatpush3.bf16.msra.mxu0 %v2370_v9  ;;  %v2552_v60 = vpop.eup %2551  ;;  %v985_v61 = vmul.f32 %v2550_v59, %v3135_v24  ;;  %v1145_v13 = vsub.s32 32, %v1144_v11  ;;  %v1156_v16 = vshll.u32 %v2773_v15, %v1144_v11  ;;  %v1147_v21 = vshll.u32 %v2774_v19, %v1144_v11 }
 0x299   :  { %2375 = vmatprep.subr.bf16.mxu0 %v2374_v53  ;;  %v2554_v62 = vpop.eup %2553  ;;  %v986_v63 = vmul.f32 %v2552_v60, %v3137_v25  ;;  %v1150_v25 = vshll.u32 %v2775_v22, %v1144_v11  ;;  %v1153_v28 = vshll.u32 %v2776_v26, %v1144_v11  ;;  %v1159_v34 = vshll.u32 %v2777_v32, %v1144_v11 }
 0x29a   :  { %v987_v1 = vmul.f32 %v2554_v62, %v3142_v31  ;;  %v1148_v24 = vshrl.u32 %v2775_v22, %v1145_v13  ;;  %v1151_v27 = vshrl.u32 %v2776_v26, %v1145_v13  ;;  %v1154_v29 = vshrl.u32 %v2773_v15, %v1145_v13 }
 0x29b   :  { %v1157_v33 = vshrl.u32 %v2777_v32, %v1145_v13  ;;  %vm1162_vm10 = vcmp.lt.s32.totalorder %v1143_v18, 1  ;;  %v1160_v39 = vshrl.u32 %v2778_v38, %v1145_v13  ;;  %vm1164_vm11 = vcmp.lt.s32.totalorder %v1143_v18, 3 }
 0x29c   :  { %2377 = vmatpush3.bf16.msra.mxu0 %v2374_v53  ;;  %v1149_v31 = vor.u32 %v1148_v24, %v1147_v21  ;;  %v1152_v35 = vor.u32 %v1151_v27, %v1150_v25  ;;  %v1155_v36 = vor.u32 %v1154_v29, %v1153_v28  ;;  %vm1163_vm12 = vcmp.lt.s32.totalorder %v1143_v18, 2 }
 0x29d   :  { %2379 = vmatprep.subr.bf16.mxu0 %v2378_v56  ;;  %v1158_v37 = vor.u32 %v1157_v33, %v1156_v16  ;;  %vm1165_vm13 = vcmp.lt.s32.totalorder %v1143_v18, 4  ;;  %v1161_v42 = vor.u32 %v1160_v39, %v1159_v34  ;;  %v1146_v44 = vshrl.u32 %v2774_v19, %v1145_v13 }
 0x29e   :  { %v1170_v40 = vsel %vm1162_vm10, %v1149_v31, %v1152_v35  ;;  %v1174_v9 = vsel %vm1162_vm10, %v1152_v35, %v1155_v36  ;;  %v1167_v47 = vsel %vm1165_vm13, %v1155_v36, 2102212464  ;;  %v547_v33 = vshrl.u32 %v488_v41, 7 }
 0x29f   :  { %v1171_v43 = vsel %vm1165_vm13, %v1158_v37, 920167782  ;;  %v1175_v50 = vsel %vm1165_vm13, %v1161_v42, 1326507024  ;;  %v1166_v45 = vsel %vm1162_vm10, %v1146_v44, %v1149_v31  ;;  %v1168_v51 = vsel %vm1164_vm11, %v1152_v35, %v1167_v47 }
 0x2a0   :  { %2381 = vmatpush3.bf16.msra.mxu0 %v2378_v56  ;;  %v1172_v46 = vsel %vm1164_vm11, %v1155_v36, %v1171_v43  ;;  %v1176_v52 = vsel %vm1164_vm11, %v1158_v37, %v1175_v50  ;;  %v1169_v53 = vsel %vm1163_vm12, %v1166_v45, %v1168_v51  ;;  %v548_v36 = vadd.s32 8, %v547_v33 }
 0x2a1   :  { %2383 = vmatprep.subr.bf16.mxu0 %v2382_v48  ;;  %v1173_v49 = vsel %vm1163_vm12, %v1170_v40, %v1172_v46  ;;  %v1177_v12 = vsel %vm1163_vm12, %v1174_v9, %v1176_v52  ;;  %v1185_v58 = vmul.u32 %v1178_v6, %v1169_v53  ;;  %vm554_vm6 = vcmp.eq.s32.totalorder %v1729_v14, %v547_v33 }
 0x2a2   :  { %v3170_v54 = vmul.u32.u64.low %v1178_v6, %v1173_v49  ;;  %v3171_v55 = vmul.u32.u64.high %v1178_v6, %v1173_v49, %v3170_v54  ;;  %v3173_v56 = vmul.u32.u64.low %v1178_v6, %v1177_v12  ;;  %v3174_v57 = vmul.u32.u64.high %v1178_v6, %v1177_v12, %v3173_v56 }
 0x2a3   :  { %vm555_vm7 = vcmp.eq.s32.totalorder %v1729_v14, %v548_v36  ;;  %v1236_v40 = vsub.s32 0, %v547_v33  ;;  %v1730_v43 = vsel %vm554_vm6, 1.0, %v2771_v0  ;;  %v1338_v33 = vld [vmem:[#allocation8 + $0x18] sm:$0xff]  ;;  %v1340_v36 = vld [vmem:[#allocation8 + $0x28] sm:$0xff] }
 0x2a4   :  { %2385 = vmatpush3.bf16.msra.mxu0 %v2382_v48  ;;  %v1188_v48 = vadd.s32 1, %v3171_v55  ;;  %vm1187_vm14 = vc.u32 %v3174_v57, %v3170_v54  ;;  %v1186_v8 = vadd.s32 %v3170_v54, %v3174_v57  ;;  %v1731_v6 = vsel %vm555_vm7, 1.0, %v2771_v0  ;;  %v1749_v0 = vld [vmem:[%s3240_s10] ss:$0 sm:$0xff] }
 0x2a5   :  { %v1323_v49 = vsel %vm1241_vm8, %v1730_v43, 0.0 }
 0x2a6   :  { %v1189_v59 = vsel %vm1187_vm14, %v1188_v48, %v3171_v55  ;;  %1324 = vadd.xlane.f32.xlu0 %v1323_v49 }
 0x2a7   :  { %2093 = vmatmul.mubr.f32.vlgmr.msra.gmra.mrb[14].mxu0 %v985_v61  ;;  %v1190_v60 = vadd.s32 %v1189_v59, %v1185_v58 }
 0x2a8   :  { %2095 = vmatprep.mubr.f32.mxu0 %v986_v63 }
 0x2a9   :  { %v1191_v61 = vadd.s32 536870912, %v1190_v60 }
 0x2ab   :  { %2096 = vmatmul.mubr.f32.gmra.mrb[16].mxu0 %v987_v1  ;;  %v1192_v62 = vshrl.u32 %v1191_v61, 30 }
 0x2ad   :  { %v1193_v63 = vshll.u32 %v1192_v62, 30  ;;  %v1216_v29 = vsub.s32 4, %v1192_v62 }
 0x2af   :  { %v1194_v1 = vsub.s32 %v1190_v60, %v1193_v63  ;;  %v1217_v30 = vsel %vm1132_vm0, %v1216_v29, %v1192_v62 }
 0x2b0   :  { %v1219_v31 = vsel %vm1131_vm1, 0, %v1217_v30 }
 0x2b1   :  { %v1196_v2 = vsub.s32 0, %v1194_v1  ;;  %v1223_v32 = vand.u32 3, %v1219_v31 }
 0x2b3   :  { %v1755_v4 = vmin.u32 %v1196_v2, %v1194_v1  ;;  %vm1228_vm2 = vcmp.eq.s32.totalorder %v1223_v32, 2  ;;  %vm1225_vm3 = vcmp.eq.s32.totalorder %v1223_v32, 0  ;;  %vm1224_vm5 = vcmp.lt.s32.totalorder %v1223_v32, 2  ;;  %v1337_v32 = vld [vmem:[#allocation8 + $0x10] sm:$0xff] }
 0x2b5   :  { %v1198_v5 = vclz %v1755_v4 }
 0x2b7   :  { %v1756_v7 = vadd.s32 4294967294, %v1198_v5 }
 0x2b9   :  { %vm1757_vm15 = vcmp.lt.s32.totalorder %v1756_v7, 0 }
 0x2ba   :  { %v1201_v10 = vsel %vm1757_vm15, 0, %v1756_v7 }
 0x2bb   :  { %v1202_v11 = vsub.s32 32, %v1201_v10  ;;  %v1203_v13 = vshll.u32 %v1194_v1, %v1201_v10  ;;  %v1206_v15 = vsub.s32 4294967266, %v1201_v10 }
 0x2bd   :  { %v1204_v16 = vshrl.u32 %v1186_v8, %v1202_v11  ;;  %v1207_v17 = vadd.s32 127, %v1206_v15 }
 0x2bf   :  { %v1205_v18 = vor.u32 %v1204_v16, %v1203_v13  ;;  %v1208_v19 = vshll.u32 %v1207_v17, 23 }
 0x2c1   :  { %v1209_v21 = vor.u32 4788187, %v1208_v19  ;;  %v1212_v22 = vcvt.s32.f32 %v1205_v18 }
 0x2c3   :  { %v1210_v24 = vand.u32 2147483647, %v1209_v21 }
 0x2c5   :  { %v1213_v25 = vmul.f32 %v1212_v22, %v1210_v24 }
 0x2c7   :  { %v1214_v26 = vxor.u32 2147483648, %v1213_v25 }
 0x2c9   :  { %v1215_v27 = vsel %vm1132_vm0, %v1214_v26, %v1213_v25 }
 0x2ca   :  { %v1218_v28 = vsel %vm1131_vm1, %v3158_v3, %v1215_v27  ;;  %v1326_v3 = vsel %vm1241_vm8, %v1731_v6, 0.0  ;;  %v1335_v27 = vld [vmem:[#allocation8] sm:$0xff] }
 0x2cb   :  { %2555 = vcosq.f32 %v1218_v28  ;;  %1327 = vadd.xlane.f32.xlu1 %v1326_v3  ;;  %v1350_v3 = vld [vmem:[#allocation8 + $0x78] sm:$0xff] }
 0x2cc   :  { %2557 = vsinq.f32 %v1218_v28  ;;  %v1336_v28 = vld [vmem:[#allocation8 + $0x8] sm:$0xff] }
 0x2cd   :  { %v2394_v31 = vpack.c.bf16 %v1336_v28, %v1335_v27  ;;  %v1538_v27 = vld [vmem:[#allocation11] sm:$0xff]  ;;  %v1539_v28 = vld [vmem:[#allocation11 + $0x8] sm:$0xff] }
 0x2d5   :  { %v2556_v34 = vpop.eup %2555 }
 0x2d6   :  { %v2558_v35 = vpop.eup %2557  ;;  %v1229_v37 = vxor.u32 2147483648, %v2556_v34 }
 0x2d7   :  { %v1226_v38 = vxor.u32 2147483648, %v2558_v35 }
 0x2d8   :  { %v1230_v39 = vsel %vm1228_vm2, %v1229_v37, %v2558_v35  ;;  %v1339_v35 = vld [vmem:[#allocation8 + $0x20] sm:$0xff]  ;;  %v1341_v37 = vld [vmem:[#allocation8 + $0x30] sm:$0xff] }
 0x2d9   :  { %v1227_v42 = vsel %vm1225_vm3, %v2556_v34, %v1226_v38  ;;  %v2398_v34 = vpack.c.bf16 %v1338_v33, %v1337_v32  ;;  %v2402_v14 = vpack.c.bf16 %v1340_v36, %v1339_v35  ;;  %v1342_v38 = vld [vmem:[#allocation8 + $0x38] sm:$0xff]  ;;  %v1542_v33 = vld [vmem:[#allocation11 + $0x20] sm:$0xff]  ;;  %v1544_v36 = vld [vmem:[#allocation11 + $0x30] sm:$0xff] }
 0x2da   :  { %v1231_v41 = vsel %vm1224_vm5, %v1227_v42, %v1230_v39  ;;  %v2406_v39 = vpack.c.bf16 %v1342_v38, %v1341_v37  ;;  %v1344_v42 = vld [vmem:[#allocation8 + $0x48] sm:$0xff]  ;;  %v1546_v38 = vld [vmem:[#allocation11 + $0x40] sm:$0xff] }
 0x2db   :  { %v1232_v44 = vsel %vm1222_vm4, nan, %v1231_v41 }
 0x2dc   :  { %v1237_v46 = vrot.slane %v1232_v44, %v1236_v40  ;;  %v1343_v40 = vld [vmem:[#allocation8 + $0x40] sm:$0xff] }
 0x2dd   :  { %v2410_v41 = vpack.c.bf16 %v1344_v42, %v1343_v40  ;;  %v1548_v42 = vld [vmem:[#allocation11 + $0x50] sm:$0xff] }
 0x2de   :  { %v1239_v9 = vmul.f32 %v1730_v43, %v1237_v46  ;;  %v3191_v47 = vmul.f32 %v1731_v6, %v1237_v46  ;;  %v1345_v43 = vld [vmem:[#allocation8 + $0x50] sm:$0xff]  ;;  %v1346_v6 = vld [vmem:[#allocation8 + $0x58] sm:$0xff]  ;;  %v1347_v46 = vld [vmem:[#allocation8 + $0x60] sm:$0xff] }
 0x2df   :  { %v2414_v44 = vpack.c.bf16 %v1346_v6, %v1345_v43  ;;  %v1550_v6 = vld [vmem:[#allocation11 + $0x60] sm:$0xff] }
 0x2e0   :  { %2106 = vmatprep.mubr.msk.f32.mxu1 %vm1241_vm8, %v1239_v9  ;;  %v1348_v9 = vld [vmem:[#allocation8 + $0x68] sm:$0xff] }
 0x35a   :  { %v2008_v50 = vpop.f32.mrb[10].mxu0 }
 0x35b   :  { %v736_v45 = vpop.f32.mrb[11].mxu0 }
 0x35e   :  { %v2011_v51 = vpop.f32.mrb[12].mxu0 }
 0x35f   :  { %v746_v52 = vpop.f32.mrb[13].mxu0 }
 0x37a   :  { %v2094_v53 = vpop.f32.mrb[14].mxu0 }
 0x37b   :  { %v1083_v12 = vadd.f32 %v2094_v53, %v1749_v0  ;;  %v1077_v54 = vpop.f32.mrb[15].mxu0 }
 0x37c   :  { %v1078_v55 = vadd.f32 %v1749_v0, %v1077_v54  ;;  %v1431_v54 = vld [vmem:[#allocation10 + $0x28] sm:$0xff] }
 0x37d   :  { %v1751_v56 = vmul.f32 -1.442695, %v1083_v12 }
 0x37e   :  { %v1750_v57 = vmul.f32 -1.442695, %v1078_v55  ;;  %v2097_v58 = vpop.f32.mrb[16].mxu0 }
 0x37f   :  { %2559 = vpow2.f32 %v1751_v56  ;;  %v1093_v48 = vadd.f32 %v2097_v58, %v1749_v0  ;;  %v1087_v59 = vpop.f32.mrb[17].mxu0  ;;  %v1432_v56 = vld [vmem:[#allocation10 + $0x30] sm:$0xff] }
 0x380   :  { %2561 = vpow2.f32 %v1750_v57  ;;  %v1088_v60 = vadd.f32 %v1749_v0, %v1087_v59  ;;  %v1429_v0 = vld [vmem:[#allocation10 + $0x18] sm:$0xff]  ;;  %v1435_v59 = vld [vmem:[#allocation10 + $0x48] sm:$0xff] }
 0x381   :  { %v1753_v61 = vmul.f32 -1.442695, %v1093_v48  ;;  %v1433_v57 = vld [vmem:[#allocation10 + $0x38] sm:$0xff] }
 0x382   :  { %v1752_v62 = vmul.f32 -1.442695, %v1088_v60  ;;  %v2438_v58 = vpack.c.bf16 %v1433_v57, %v1432_v56 }
 0x383   :  { %2563 = vpow2.f32 %v1753_v61  ;;  %v1437_v61 = vld [vmem:[#allocation10 + $0x58] sm:$0xff] }
 0x384   :  { %2565 = vpow2.f32 %v1752_v62 }
 0x389   :  { %v2560_v63 = vpop.eup %2559 }
 0x38a   :  { %v2562_v1 = vpop.eup %2561  ;;  %v1109_v2 = vadd.f32 1.0, %v2560_v63  ;;  %v1438_v63 = vld [vmem:[#allocation10 + $0x60] sm:$0xff] }
 0x38b   :  { %v1108_v4 = vadd.f32 1.0, %v2562_v1  ;;  %v1439_v1 = vld [vmem:[#allocation10 + $0x68] sm:$0xff] }
 0x38c   :  { %2567 = vrcp.f32 %v1109_v2  ;;  %v2450_v2 = vpack.c.bf16 %v1439_v1, %v1438_v63 }
 0x38d   :  { %v2564_v5 = vpop.eup %2563  ;;  %2569 = vrcp.f32 %v1108_v4  ;;  %v1440_v4 = vld [vmem:[#allocation10 + $0x70] sm:$0xff] }
 0x38e   :  { %v2566_v7 = vpop.eup %2565  ;;  %v1111_v8 = vadd.f32 1.0, %v2564_v5  ;;  %v1441_v5 = vld [vmem:[#allocation10 + $0x78] sm:$0xff] }
 0x38f   :  { %v1110_v10 = vadd.f32 1.0, %v2566_v7  ;;  %v2454_v7 = vpack.c.bf16 %v1441_v5, %v1440_v4 }
 0x390   :  { %2571 = vrcp.f32 %v1111_v8 }
 0x391   :  { %2573 = vrcp.f32 %v1110_v10 }
 0x396   :  { %v2568_v11 = vpop.eup %2567 }
 0x397   :  { %v2570_v13 = vpop.eup %2569  ;;  %v1121_v15 = vmul.f32 %v2568_v11, %v1083_v12  ;;  %v1430_v12 = vld [vmem:[#allocation10 + $0x20] sm:$0xff]  ;;  %v1328_v11 = vpop.xlane.xlu1 %1327 }
 0x398   :  { %v1120_v16 = vmul.f32 %v2570_v13, %v1078_v55  ;;  %v2434_v55 = vpack.c.bf16 %v1431_v54, %v1430_v12  ;;  %v1325_v13 = vpop.xlane.xlu0 %1324 }
 0x399   :  { %v1125_v17 = vmul.f32 %v2008_v50, %v1121_v15  ;;  %v1426_v50 = vld [vmem:[#allocation10] sm:$0xff]  ;;  %v1330_v15 = vmax.f32 %v1328_v11, 1.0 }
 0x39a   :  { %v2572_v18 = vpop.eup %2571  ;;  %v1124_v19 = vmul.f32 %v1120_v16, %v736_v45  ;;  %v1427_v45 = vld [vmem:[#allocation10 + $0x8] sm:$0xff]  ;;  %v1329_v16 = vmax.f32 %v1325_v13, 1.0 }
 0x39b   :  { %v2574_v21 = vpop.eup %2573  ;;  %v1123_v22 = vmul.f32 %v2572_v18, %v1093_v48  ;;  %v1434_v48 = vld [vmem:[#allocation10 + $0x40] sm:$0xff]  ;;  %2575 = vrcp.f32 %v1330_v15 }
 0x39c   :  { %v1122_v24 = vmul.f32 %v2574_v21, %v1088_v60  ;;  %v2386_v25 = vpack.c.bf16 %v1125_v17, %v1124_v19  ;;  %v1436_v60 = vld [vmem:[#allocation10 + $0x50] sm:$0xff]  ;;  %2577 = vrcp.f32 %v1329_v16 }
 0x39d   :  { %v1127_v26 = vmul.f32 %v2011_v51, %v1123_v22  ;;  %v1428_v51 = vld [vmem:[#allocation10 + $0x10] sm:$0xff]  ;;  %v2446_v62 = vpack.c.bf16 %v1437_v61, %v1436_v60 }
 0x39e   :  { %v1126_v29 = vmul.f32 %v1122_v24, %v746_v52  ;;  %2387 = vmatprep.subr.bf16.mxu1 %v2386_v25  ;;  %v2426_v52 = vpack.c.bf16 %v1427_v45, %v1426_v50  ;;  %v2430_v53 = vpack.c.bf16 %v1429_v0, %v1428_v51 }
 0x39f   :  { %2389 = vmatpush3.bf16.msra.mxu1 %v2386_v25 }
 0x3a0   :  { %v2390_v30 = vpack.c.bf16 %v1127_v26, %v1126_v29  ;;  %2427 = vmatprep.subr.bf16.mxu0 %v2426_v52  ;;  %v2458_v29 = vpack.c.bf16 %v1539_v28, %v1538_v27 }
 0x3a1   :  { %2429 = vmatpush3.bf16.msra.mxu0 %v2426_v52 }
 0x3a2   :  { %2391 = vmatprep.subr.bf16.mxu1 %v2390_v30  ;;  %2431 = vmatprep.subr.bf16.mxu0 %v2430_v53 }
 0x3a3   :  { %2393 = vmatpush3.bf16.msra.mxu1 %v2390_v30  ;;  %v1540_v30 = vld [vmem:[#allocation11 + $0x10] sm:$0xff] }
 0x3a4   :  { %2395 = vmatprep.subr.bf16.mxu1 %v2394_v31 }
 0x3a5   :  { %2433 = vmatpush3.bf16.msra.mxu0 %v2430_v53  ;;  %v2576_v17 = vpop.eup %2575 }
 0x3a6   :  { %2107 = vmatmul.mubr.msk.f32.vlgmr.msra.gmra.mrb[6].mxu1 %vm1241_vm8, %v3191_v47  ;;  %v1349_v47 = vld [vmem:[#allocation8 + $0x70] sm:$0xff]  ;;  %2435 = vmatprep.subr.bf16.mxu0 %v2434_v55  ;;  %v2578_v18 = vpop.eup %2577 }
 0x3a7   :  { %2397 = vmatpush3.bf16.msra.mxu1 %v2394_v31  ;;  %2141 = vmatprep.mubr.f32.mxu1 %v3133_v23  ;;  %v2418_v23 = vpack.c.bf16 %v1348_v9, %v1347_v46  ;;  %v2422_v49 = vpack.c.bf16 %v1350_v3, %v1349_v47  ;;  %v1541_v31 = vld [vmem:[#allocation11 + $0x18] sm:$0xff]  ;;  %v1552_v9 = vld [vmem:[#allocation11 + $0x70] sm:$0xff]  ;;  %v1760_v3 = vld [vmem:[%s3246_s16] ss:$0 sm:$0xff] }
 0x3a8   :  { %2399 = vmatprep.subr.bf16.mxu1 %v2398_v34  ;;  %v2462_v32 = vpack.c.bf16 %v1541_v31, %v1540_v30 }
 0x3a9   :  { %2437 = vmatpush3.bf16.msra.mxu0 %v2434_v55 }
 0x3aa   :  { %2439 = vmatprep.subr.bf16.mxu0 %v2438_v58 }
 0x3ab   :  { %2401 = vmatpush3.bf16.msra.mxu1 %v2398_v34  ;;  %v1543_v34 = vld [vmem:[#allocation11 + $0x28] sm:$0xff] }
 0x3ac   :  { %2403 = vmatprep.subr.bf16.mxu1 %v2402_v14  ;;  %v2466_v35 = vpack.c.bf16 %v1543_v34, %v1542_v33 }
 0x3ad   :  { %2441 = vmatpush3.bf16.msra.mxu0 %v2438_v58 }
 0x3af   :  { %2405 = vmatpush3.bf16.msra.mxu1 %v2402_v14  ;;  %v1545_v14 = vld [vmem:[#allocation11 + $0x38] sm:$0xff] }
 0x3b0   :  { %2407 = vmatprep.subr.bf16.mxu1 %v2406_v39  ;;  %v2470_v37 = vpack.c.bf16 %v1545_v14, %v1544_v36 }
 0x3b3   :  { %2409 = vmatpush3.bf16.msra.mxu1 %v2406_v39  ;;  %v1547_v39 = vld [vmem:[#allocation11 + $0x48] sm:$0xff] }
 0x3b4   :  { %2411 = vmatprep.subr.bf16.mxu1 %v2410_v41  ;;  %v2474_v40 = vpack.c.bf16 %v1547_v39, %v1546_v38 }
 0x3b7   :  { %2413 = vmatpush3.bf16.msra.mxu1 %v2410_v41  ;;  %v1549_v41 = vld [vmem:[#allocation11 + $0x58] sm:$0xff] }
 0x3b8   :  { %2415 = vmatprep.subr.bf16.mxu1 %v2414_v44  ;;  %v2478_v43 = vpack.c.bf16 %v1549_v41, %v1548_v42 }
 0x3bb   :  { %2417 = vmatpush3.bf16.msra.mxu1 %v2414_v44  ;;  %v1551_v44 = vld [vmem:[#allocation11 + $0x68] sm:$0xff] }
 0x3bc   :  { %2419 = vmatprep.subr.bf16.mxu1 %v2418_v23  ;;  %v2482_v46 = vpack.c.bf16 %v1551_v44, %v1550_v6 }
 0x3bf   :  { %2421 = vmatpush3.bf16.msra.mxu1 %v2418_v23  ;;  %v1553_v23 = vld [vmem:[#allocation11 + $0x78] sm:$0xff] }
 0x3c0   :  { %2423 = vmatprep.subr.bf16.mxu1 %v2422_v49  ;;  %v2486_v47 = vpack.c.bf16 %v1553_v23, %v1552_v9 }
 0x3c3   :  { %2425 = vmatpush3.bf16.msra.mxu1 %v2422_v49 }
 0x3c4   :  { %2459 = vmatprep.subr.bf16.mxu1 %v2458_v29 }
 0x3c6   :  { %2142 = vmatmul.mubr.f32.vlgmr.msra.gmra.mrb[8].mxu1 %v3131_v20  ;;  %v2442_v20 = vpack.c.bf16 %v1435_v59, %v1434_v48  ;;  %v1763_v59 = vld [vmem:[%s3248_s18] ss:$0 sm:$0xff] }
 0x3c7   :  { %2461 = vmatpush3.bf16.msra.mxu1 %v2458_v29  ;;  %v1764_v29 = vld [vmem:[%s3249_s19] ss:$0 sm:$0xff]  ;;  %s2779_s19 = smov [#allocation13]  }
 0x3c8   :  { %2443 = vmatprep.subr.bf16.mxu0 %v2442_v20  ;;  %2463 = vmatprep.subr.bf16.mxu1 %v2462_v32  ;;  %s1700_s30 = sshll.u32 %s2779_s19, 4  ;;  %s1701_s30 = int_to_ptr.vmem [resolvable:$true] %s1700_s30 }
 0x3c9   :  { %2445 = vmatpush3.bf16.msra.mxu0 %v2442_v20  ;;  %p2734_p7 = scmp.lt.s32.totalorder %s1701_s30, %s1701_s30 }
 0x3ca   :  { %2447 = vmatprep.subr.bf16.mxu0 %v2446_v62 }
 0x3cb   :  { %2465 = vmatpush3.bf16.msra.mxu1 %v2462_v32  ;;  %v1765_v32 = vld [vmem:[%s3250_s20] ss:$0 sm:$0xff]  ;;  %s2729_s20 = scalar_lea.vmem %s1701_s30, 256 }
 0x3cc   :  { %2467 = vmatprep.subr.bf16.mxu1 %v2466_v35  ;;  %p2730_p6 = scmp.ne.s32.totalorder %s1701_s30, %s2729_s20  ;;  %p2735_p8 = scmp.lt.s32.totalorder %s2729_s20, %s2729_s20 }
 0x3cd   :  { %2449 = vmatpush3.bf16.msra.mxu0 %v2446_v62 }
 0x3ce   :  { %2451 = vmatprep.subr.bf16.mxu0 %v2450_v2  ;;  %p2736_p9 = por %p2735_p8, %p2734_p7 }
 0x3cf   :  { %2469 = vmatpush3.bf16.msra.mxu1 %v2466_v35 }
 0x3d0   :  { %2471 = vmatprep.subr.bf16.mxu1 %v2470_v37  ;;  %p2737_p10 = pnand %p2736_p9, %p2730_p6 }
 0x3d1   :  { %2453 = vmatpush3.bf16.msra.mxu0 %v2450_v2 }
 0x3d2   :  { %2455 = vmatprep.subr.bf16.mxu0 %v2454_v7 }
 0x3d3   :  { %2473 = vmatpush3.bf16.msra.mxu1 %v2470_v37 }
 0x3d4   :  { %2475 = vmatprep.subr.bf16.mxu1 %v2474_v40 }
 0x3d5   :  { %2457 = vmatpush3.bf16.msra.mxu0 %v2454_v7 }
 0x3d7   :  { %2477 = vmatpush3.bf16.msra.mxu1 %v2474_v40 }
 0x3d8   :  { %2479 = vmatprep.subr.bf16.mxu1 %v2478_v43 }
 0x3db   :  { %2481 = vmatpush3.bf16.msra.mxu1 %v2478_v43 }
 0x3dc   :  { %2483 = vmatprep.subr.bf16.mxu1 %v2482_v46 }
 0x3df   :  { %2485 = vmatpush3.bf16.msra.mxu1 %v2482_v46 }
 0x3e0   :  { %2487 = vmatprep.subr.bf16.mxu1 %v2486_v47 }
 0x3e3   :  { %2489 = vmatpush3.bf16.msra.mxu1 %v2486_v47 }
 0x479   :  { %v2108_v8 = vpop.f32.mrb[6].mxu1 }
 0x47a   :  { %v1314_v10 = vpop.f32.mrb[7].mxu1  ;;  %v1334_v19 = vmul.f32 %v2576_v17, %v2108_v8 }
 0x47b   :  { %v1333_v21 = vmul.f32 %v2578_v18, %v1314_v10 }
 0x499   :  { %v2143_v22 = vpop.f32.mrb[8].mxu1 }
 0x49a   :  { %v1423_v24 = vadd.f32 %v2143_v22, %v1334_v19  ;;  %v1417_v25 = vpop.f32.mrb[9].mxu1 }
 0x49b   :  { %v1418_v26 = vadd.f32 %v1417_v25, %v1333_v21 }
 0x49d   :  { %2176 = vmatprep.mubr.f32.mxu0 %v1418_v26 }
 0x49e   :  { %2177 = vmatmul.mubr.f32.vlgmr.msra.gmra.mrb[18].mxu0 %v1423_v24 }
 0x571   :  { %v2178_v49 = vpop.f32.mrb[18].mxu0 }
 0x572   :  { %v1521_v50 = vadd.f32 %v2178_v49, %v1760_v3  ;;  %v1515_v45 = vpop.f32.mrb[19].mxu0 }
 0x573   :  { %v1516_v51 = vadd.f32 %v1760_v3, %v1515_v45 }
 0x574   :  { %v1762_v52 = vmul.f32 -1.442695, %v1521_v50 }
 0x575   :  { %v1761_v0 = vmul.f32 -1.442695, %v1516_v51 }
 0x576   :  { %2579 = vpow2.f32 %v1762_v52 }
 0x577   :  { %2581 = vpow2.f32 %v1761_v0 }
 0x580   :  { %v2580_v53 = vpop.eup %2579 }
 0x581   :  { %v2582_v12 = vpop.eup %2581  ;;  %v1531_v54 = vadd.f32 1.0, %v2580_v53 }
 0x582   :  { %v1530_v55 = vadd.f32 1.0, %v2582_v12 }
 0x583   :  { %2583 = vrcp.f32 %v1531_v54 }
 0x584   :  { %2585 = vrcp.f32 %v1530_v55 }
 0x58d   :  { %v2584_v56 = vpop.eup %2583 }
 0x58e   :  { %v2586_v57 = vpop.eup %2585  ;;  %v1537_v48 = vmul.f32 %v2584_v56, %v1521_v50 }
 0x58f   :  { %v1536_v58 = vmul.f32 %v2586_v57, %v1516_v51 }
 0x591   :  { %2211 = vmatprep.mubr.f32.mxu1 %v1536_v58 }
 0x592   :  { %2212 = vmatmul.mubr.f32.vlgmr.msra.gmra.mrb[10].mxu1 %v1537_v48 }
 0x665   :  { %v2213_v20 = vpop.f32.mrb[10].mxu1 }
 0x666   :  { %v1633_v60 = vadd.f32 %v2213_v20, %v1763_v59  ;;  %v1627_v61 = vpop.f32.mrb[11].mxu1 }
 0x667   :  { %v1628_v62 = vadd.f32 %v1763_v59, %v1627_v61 }
 0x669   :  { %v1636_v63 = vadd.f32 %v1633_v60, %v1628_v62 }
 0x66b   :  { %v1637_v1 = vrot.slane %v1636_v63, 4 }
 0x66d   :  { %v1638_v2 = vadd.f32 %v1637_v1, %v1636_v63 }
 0x66f   :  { %v1639_v4 = vrot.slane %v1638_v2, 2 }
 0x671   :  { %v1640_v5 = vadd.f32 %v1639_v4, %v1638_v2 }
 0x673   :  { %v1641_v7 = vrot.slane %v1640_v5, 1 }
 0x675   :  { %v1642_v8 = vadd.f32 %v1641_v7, %v1640_v5 }
 0x677   :  { %v1644_v10 = vmul.f32 0.0625, %v1642_v8 }
 0x679   :  { %v1645_v11 = vsub.f32 %v1628_v62, %v1644_v10  ;;  %v1646_v13 = vsub.f32 %v1633_v60, %v1644_v10 }
 0x67b   :  { %v1647_v15 = vmul.f32 %v1645_v11, %v1645_v11  ;;  %v1648_v16 = vmul.f32 %v1646_v13, %v1646_v13 }
 0x67d   :  { %v1649_v17 = vadd.f32 %v1648_v16, %v1647_v15 }
 0x67f   :  { %v1650_v18 = vrot.slane %v1649_v17, 4 }
 0x681   :  { %v1651_v19 = vadd.f32 %v1650_v18, %v1649_v17 }
 0x683   :  { %v1652_v21 = vrot.slane %v1651_v19, 2 }
 0x685   :  { %v1653_v22 = vadd.f32 %v1652_v21, %v1651_v19 }
 0x687   :  { %v1654_v24 = vrot.slane %v1653_v22, 1 }
 0x689   :  { %v1655_v25 = vadd.f32 %v1654_v24, %v1653_v22 }
 0x68b   :  { %v1656_v26 = vmul.f32 0.0625, %v1655_v25 }
 0x68d   :  { %v1657_v27 = vadd.f32 1e-05, %v1656_v26 }
 0x68f   :  { %2587 = vrsqrt.f32 %v1657_v27 }
 0x699   :  { %v2588_v28 = vpop.eup %2587 }
 0x69a   :  { %v1659_v30 = vmul.f32 %v2588_v28, %v1645_v11  ;;  %v1660_v31 = vmul.f32 %v2588_v28, %v1646_v13 }
 0x69c   :  { %v1668_v33 = vmul.f32 %v1764_v29, %v1659_v30  ;;  %v1669_v34 = vmul.f32 %v1764_v29, %v1660_v31 }
 0x69e   :  { %v1677_v35 = vadd.f32 %v1765_v32, %v1668_v33  ;;  %v1678_v36 = vadd.f32 %v1765_v32, %v1669_v34 }
 0x6a0   :  { %v1766_v14 = vmul.f32 -1.442695, %v1677_v35  ;;  %v1767_v37 = vmul.f32 -1.442695, %v1678_v36 }
 0x6a2   :  { %2589 = vpow2.f32 %v1766_v14 }
 0x6a3   :  { %2591 = vpow2.f32 %v1767_v37 }
 0x6ac   :  { %v2590_v38 = vpop.eup %2589 }
 0x6ad   :  { %v2592_v39 = vpop.eup %2591  ;;  %v1685_v40 = vadd.f32 1.0, %v2590_v38 }
 0x6ae   :  { %v1686_v42 = vadd.f32 1.0, %v2592_v39 }
 0x6af   :  { %2593 = vrcp.f32 %v1685_v40 }
 0x6b0   :  { %2595 = vrcp.f32 %v1686_v42 }
 0x6b9   :  { %v2594_v41 = vpop.eup %2593 }
 0x6ba   :  { %v2596_v43 = vpop.eup %2595  ;;  %v1691_v6 = vmul.f32 %v2594_v41, %v1677_v35 }
 0x6bb   :  { %v1692_v44 = vmul.f32 %v2596_v43, %v1678_v36 }
 0x6bc   :  { %1693 = vst [vmem:[#allocation13] sm:$0xff] %v1691_v6 }
 0x6bd   :  { %1694 = vst [vmem:[#allocation13 + $0x8] sm:$0xff] %v1692_v44 }
 0x6be   :  { %2740 = shalt.err (!%p2737_p10)
}
 0x6bf   :  { %s3270_s17 = sld [smem:[#allocation25_spill]] }
 0x6c5   :  { %s2741_s9 = scalar_lea.hbm %s3270_s17, 256 }
 0x6c6   :  { %p2742_p11 = scmp.ne.s32.totalorder %s3270_s17, %s2741_s9  ;;  %p2745_p12 = scmp.lt.u32.totalorder %s2741_s9, %s3270_s17 }
 0x6c8   :  { %p2747_p13 = pnand %p2745_p12, %p2742_p11 }
 0x6ca   :  { %2750 = shalt.err (!%p2747_p13)
}
 0x6cb   :  { %1706 = dma.vmem_to_hbm [thread:$0]  %s1701_s30, 256, %s3270_s17, [#allocation4], %s2762_s5, %s2762_s5, %s2763_s22  }
 0x6cc   :  { %2759 = dma.done.wait [#allocation4], 256  }
 0x6cd   :  { %2760 = vsyncadd [#allocation4], 4294967040 }
 0x6ce   :  { %1710 = vsyncpa [#allocation3], 1 }
 0x6cf   :  { %1711 = vsyncpa [#allocation6], 1 }
 0x6d0   :  { %1712 = vsyncpa [#allocation9], 1 }
 0x6d1   :  { %1713 = vsyncpa [#allocation12], 1 }
 0x6d2   :  { %1714 = vsyncpa [#allocation4], 1 }

</bundles_post_ra>
